<compile_context>
chip_gen: v7x
topology: tpu7x:2x2x1
jax: 0.10.0
libtpu: 0.0.40
codegen_flags: <defaults>
</compile_context>

<pallas_src>
import jax
import jax.numpy as jnp
from jax.experimental import pallas as pl
from jax.experimental.pallas import tpu as pltpu

# ---------------------------------------------------------------------------
# Config (small shapes, consistent with DetaNet defaults scaled down)
# ---------------------------------------------------------------------------
B_MOL = 4            # molecules per pallas_call (grid axis, "parallel")
N_ATOMS = 8          # num_atom per molecule
F = 32               # num_features
R = 16               # num_radial
MAXL = 3
C_SH = (MAXL + 1) ** 2 - 1   # 15  (l = 1..3, l=0 excluded as in irreps_sh[1:])
C_PAD = 16                   # 15 -> 16 sublane-aligned channel count
NUM_BLOCK = 3
RC = 5.0
MAX_Z = 9
SCALE = 1.0


def _silu(x):
    # learnable-swish stand-in (beta = 1), f32 on the VPU/EUP
    return x / (1.0 + jnp.exp(-x))


# ---------------------------------------------------------------------------
# Fused Pallas kernel (per molecule): embedding-in -> 3 blocks -> readout+sum
# ---------------------------------------------------------------------------
def detanet_fused_kernel(S0_ref, rbf_ref, shT_ref,
                         wfs_ref, wft_ref, wv_ref, w1_ref, b1_ref,
                         w2_ref, b2_ref,
                         rw1_ref, rb1_ref, rw2_ref, rb2_ref,
                         out_ref, s_out_ref, t_out_ref):
    """One molecule of DetaNet's hot path.

    S0_ref : [N, F]          initial scalar node features (embedding), f32
    rbf_ref: [N*N, R]        cutoff-masked radial basis, pre-flattened, bf16
    shT_ref: [N, 16, N]      cutoff-masked spherical harmonics, pre-transposed
                             + zero-padded channel, bf16
    wfs/wft: [NB, R, F]      per-block radial-filter weights (bf16)
    wv/w1/w2: [NB, F, F]     per-block value / MLP weights (bf16)
    b1/b2  : [NB, 1, F]      per-block MLP biases (f32)
    rw1/rb1/rw2/rb2          readout MLP (F -> F -> 1), weights bf16/bias f32
    out_ref  : [1, 1]        summed molecular scalar
    s_out_ref: [N, F]        final scalar features
    t_out_ref: [N, 16, F]    final equivariant features (channel 15 is pad)
    """
    N, Fd = S0_ref.shape
    C = shT_ref.shape[1]
    bf16 = jnp.bfloat16

    rbf2 = rbf_ref[...]                       # [N*N, R]   bf16
    shT = shT_ref[...]                        # [N, C, N]  bf16

    # S / T stay in local values (vregs) across all blocks; outputs written once.
    S = S0_ref[...]                           # [N, F]     f32
    T = jnp.zeros((N, C, Fd), jnp.float32)    # [N, C, F]  f32

    for blk in range(NUM_BLOCK):              # static unroll (NB = 3)
        # radial filters for this block: two small lane-aligned MXU matmuls
        filt_s = jnp.dot(rbf2, wfs_ref[blk],
                         preferred_element_type=jnp.float32).reshape(N, N, Fd)
        filt_t = jnp.dot(rbf2, wft_ref[blk],
                         preferred_element_type=jnp.float32).reshape(N, N, Fd)

        # value projection of sender features (MXU, bf16 in / f32 acc)
        V = jnp.dot(S.astype(bf16), wv_ref[blk],
                    preferred_element_type=jnp.float32)          # [N, F]
        Vj = V[None, :, :]                                       # senders

        # scalar messages: sum over senders j, then swish MLP node update
        msg_s = jnp.sum(filt_s * Vj, axis=1)                     # [N, F]
        h = _silu(jnp.dot(msg_s.astype(bf16), w1_ref[blk],
                          preferred_element_type=jnp.float32) + b1_ref[blk])
        dS = jnp.dot(h.astype(bf16), w2_ref[blk],
                     preferred_element_type=jnp.float32) + b2_ref[blk]
        S = S + dS

        # equivariant messages: batched MXU contraction over senders j
        gated = (filt_t * Vj).astype(bf16)                       # [N, N, F]
        msg_t = jnp.einsum('icj,ijf->icf', shT, gated,
                           preferred_element_type=jnp.float32)   # [N, C, F]
        T = T + msg_t

    # readout: sout MLP (F -> F -> 1) + atom sum (summation=True)
    h = _silu(jnp.dot(S.astype(bf16), rw1_ref[...],
                      preferred_element_type=jnp.float32) + rb1_ref[...])
    outs = jnp.dot(h.astype(bf16), rw2_ref[...],
                   preferred_element_type=jnp.float32) + rb2_ref[...]   # [N, 1]
    out_ref[...] = jnp.sum(outs, axis=0, keepdims=True)                 # [1, 1]

    # single writeback of the latent features
    s_out_ref[...] = S
    t_out_ref[...] = T


# ---------------------------------------------------------------------------
# pallas_call wrapper: grid over molecules ("parallel")
# ---------------------------------------------------------------------------
def _mol_spec(shape):
    """Per-molecule block: squeeze the leading batch dim, full tile otherwise."""
    nd = len(shape)
    return pl.BlockSpec((pl.Squeezed(),) + tuple(shape),
                        lambda b, _nd=nd: (b,) + (0,) * _nd)


def _const_spec(shape):
    """Batch-invariant weights: full array, same block for every grid step."""
    nd = len(shape)
    return pl.BlockSpec(tuple(shape), lambda b, _nd=nd: (0,) * _nd)


def run_detanet_fused(S0, rbf2, shT, params):
    B = S0.shape[0]
    bf16 = jnp.bfloat16
    r = params["readout"]

    in_specs = [
        _mol_spec((N_ATOMS, F)),                    # S0
        _mol_spec((N_ATOMS * N_ATOMS, R)),          # rbf2
        _mol_spec((N_ATOMS, C_PAD, N_ATOMS)),       # shT
        _const_spec((NUM_BLOCK, R, F)),             # wfs
        _const_spec((NUM_BLOCK, R, F)),             # wft
        _const_spec((NUM_BLOCK, F, F)),             # wv
        _const_spec((NUM_BLOCK, F, F)),             # w1
        _const_spec((NUM_BLOCK, 1, F)),             # b1
        _const_spec((NUM_BLOCK, F, F)),             # w2
        _const_spec((NUM_BLOCK, 1, F)),             # b2
        _const_spec((F, F)),                        # rw1
        _const_spec((1, F)),                        # rb1
        _const_spec((F, 1)),                        # rw2
        _const_spec((1, 1)),                        # rb2
    ]
    out_specs = (
        _mol_spec((1, 1)),                          # molecular scalar
        _mol_spec((N_ATOMS, F)),                    # S
        _mol_spec((N_ATOMS, C_PAD, F)),             # T (padded channels)
    )
    out_shape = (
        jax.ShapeDtypeStruct((B, 1, 1), jnp.float32),
        jax.ShapeDtypeStruct((B, N_ATOMS, F), jnp.float32),
        jax.ShapeDtypeStruct((B, N_ATOMS, C_PAD, F), jnp.float32),
    )

    fn = pl.pallas_call(
        detanet_fused_kernel,
        out_shape=out_shape,
        grid=(B,),
        in_specs=in_specs,
        out_specs=out_specs,
        compiler_params=pltpu.CompilerParams(
            dimension_semantics=("parallel",)),
    )
    return fn(S0, rbf2, shT,
              params["wfs"].astype(bf16), params["wft"].astype(bf16),
              params["wv"].astype(bf16), params["w1"].astype(bf16),
              params["b1"],
              params["w2"].astype(bf16), params["b2"],
              r["w1"].astype(bf16), r["b1"], r["w2"].astype(bf16), r["b2"])


# ---------------------------------------------------------------------------
# Glue: geometry, radial basis, spherical harmonics, embedding, params
# (all layout plumbing — transpose / flatten / channel pad — done here)
# ---------------------------------------------------------------------------
def spherical_harmonics_l123(u):
    """Real spherical harmonics for l=1..3 on unit vectors, 'component'
    normalization.  u: [..., 3].
    NOTE: exact e3nn m-ordering not reproduced (synthetic parameters make it
    an equivalent basis)."""
    x, y, z = u[..., 0], u[..., 1], u[..., 2]
    s3, s15, s5 = jnp.sqrt(3.0), jnp.sqrt(15.0), jnp.sqrt(5.0)
    s70, s105, s42, s7 = (jnp.sqrt(70.0), jnp.sqrt(105.0),
                          jnp.sqrt(42.0), jnp.sqrt(7.0))
    l1 = [s3 * x, s3 * y, s3 * z]
    l2 = [s15 * x * y, s15 * y * z, 0.5 * s5 * (3.0 * z * z - 1.0),
          s15 * x * z, 0.5 * s15 * (x * x - y * y)]
    l3 = [0.25 * s70 * y * (3.0 * x * x - y * y),
          s105 * x * y * z,
          0.25 * s42 * y * (5.0 * z * z - 1.0),
          0.5 * s7 * z * (5.0 * z * z - 3.0),
          0.25 * s42 * x * (5.0 * z * z - 1.0),
          0.5 * s105 * z * (x * x - y * y),
          0.25 * s70 * x * (x * x - 3.0 * y * y)]
    return jnp.stack(l1 + l2 + l3, axis=-1)          # [..., 15]


def bessel_rbf(r, freqs, rc):
    """trainable_bessel radial basis: sqrt(2/rc) * sin(f_n r / rc) / r."""
    safe_r = jnp.maximum(r, 1e-6)[..., None]
    return jnp.sqrt(2.0 / rc) * jnp.sin(freqs * safe_r / rc) / safe_r


def _uniform(key, shape, fan_in):
    bound = 1.0 / jnp.sqrt(float(fan_in))
    return jax.random.uniform(key, shape, jnp.float32, -bound, bound)


def init_params(key):
    keys = jax.random.split(key, 12)
    k = iter(keys)
    p = {}
    p["embedding"] = _uniform(next(k), (MAX_Z + 1, F), 1)
    p["bessel_freqs"] = jnp.pi * jnp.arange(1, R + 1, dtype=jnp.float32)
    p["wfs"] = _uniform(next(k), (NUM_BLOCK, R, F), R)     # scalar-channel filters
    p["wft"] = _uniform(next(k), (NUM_BLOCK, R, F), R)     # tensor-channel filters
    p["wv"] = _uniform(next(k), (NUM_BLOCK, F, F), F)
    p["w1"] = _uniform(next(k), (NUM_BLOCK, F, F), F)
    p["b1"] = _uniform(next(k), (NUM_BLOCK, 1, F), F)
    p["w2"] = _uniform(next(k), (NUM_BLOCK, F, F), F)
    p["b2"] = _uniform(next(k), (NUM_BLOCK, 1, F), F)
    p["readout"] = {
        "w1": _uniform(next(k), (F, F), F),
        "b1": _uniform(next(k), (1, F), F),
        "w2": _uniform(next(k), (F, 1), F),
        "b2": _uniform(next(k), (1, 1), F),
    }
    return p


def detanet_forward(z, pos, params):
    """z: [B, N] atomic numbers; pos: [B, N, 3] coordinates."""
    B, N = z.shape
    # Embedding lookup (glue; the hot path is in the fused Pallas kernel)
    S0 = params["embedding"][z]                              # [B, N, F]

    # dense radius graph (replaces radius_graph + edge_index gather)
    rij = pos[:, None, :, :] - pos[:, :, None, :]            # rij[b,i,j]=pos[j]-pos[i]
    r = jnp.linalg.norm(rij, axis=-1)                        # [B, N, N]
    eye = jnp.eye(N, dtype=bool)[None]
    mask = ((r < RC) & (~eye)).astype(jnp.float32)[..., None]

    u = rij / jnp.maximum(r, 1e-6)[..., None]
    sh = spherical_harmonics_l123(u) * mask                  # [B, N, N, 15]
    rbf = bessel_rbf(r, params["bessel_freqs"], RC) * mask   # [B, N, N, 16]

    # layout plumbing in the glue (per review): pad channels 15->16,
    # pre-transpose sh to [B, i, c, j], pre-flatten rbf to [B, N*N, R],
    # ship MXU operands in bf16.
    sh_pad = jnp.concatenate(
        [sh, jnp.zeros((B, N, N, C_PAD - C_SH), sh.dtype)], axis=-1)
    shT = jnp.swapaxes(sh_pad, 2, 3).astype(jnp.bfloat16)    # [B, N, 16, N]
    rbf2 = rbf.reshape(B, N * N, R).astype(jnp.bfloat16)     # [B, N*N, R]

    out3, S, T_pad = run_detanet_fused(S0, rbf2, shT, params)
    out = out3.reshape(B, 1) * SCALE                         # [B, scalar_outsize]
    T = T_pad[:, :, :C_SH, :]                                # drop zero pad channel
    return out, S, T


if __name__ == "__main__":
    key = jax.random.PRNGKey(0)
    kz, kpos, kparam = jax.random.split(key, 3)

    z = jax.random.randint(kz, (B_MOL, N_ATOMS), 1, MAX_Z + 1)           # atomic numbers
    pos = jax.random.normal(kpos, (B_MOL, N_ATOMS, 3), jnp.float32) * 1.5  # coords
    params = init_params(kparam)

    forward = jax.jit(detanet_forward)
    out, S, T = forward(z, pos, params)
    jax.block_until_ready(out)
    jax.block_until_ready(S)
    jax.block_until_ready(T)

    assert out.shape == (B_MOL, 1)
    assert S.shape == (B_MOL, N_ATOMS, F)
    assert T.shape == (B_MOL, N_ATOMS, C_SH, F)
    print("KERNEL_OK")
</pallas_src>

<mosaic_0001>
module attributes {stable_mosaic.version = 11 : i64} {
  func.func @detanet_fused_kernel(%arg0: i32, %arg1: memref<1x8x32xf32, #tpu.memory_space<vmem>>, %arg2: memref<1x64x16xbf16, #tpu.memory_space<vmem>>, %arg3: memref<1x8x16x8xbf16, #tpu.memory_space<vmem>>, %arg4: memref<3x16x32xbf16, #tpu.memory_space<vmem>>, %arg5: memref<3x16x32xbf16, #tpu.memory_space<vmem>>, %arg6: memref<3x32x32xbf16, #tpu.memory_space<vmem>>, %arg7: memref<3x32x32xbf16, #tpu.memory_space<vmem>>, %arg8: memref<3x1x32xf32, #tpu.memory_space<vmem>>, %arg9: memref<3x32x32xbf16, #tpu.memory_space<vmem>>, %arg10: memref<3x1x32xf32, #tpu.memory_space<vmem>>, %arg11: memref<32x32xbf16, #tpu.memory_space<vmem>>, %arg12: memref<1x32xf32, #tpu.memory_space<vmem>>, %arg13: memref<32x1xbf16, #tpu.memory_space<vmem>>, %arg14: memref<1x1xf32, #tpu.memory_space<vmem>>, %arg15: memref<1x1x1xf32, #tpu.memory_space<vmem>>, %arg16: memref<1x8x32xf32, #tpu.memory_space<vmem>>, %arg17: memref<1x8x16x32xf32, #tpu.memory_space<vmem>>) attributes {dimension_semantics = [#tpu.dimension_semantics<parallel>], iteration_bounds = array<i64: 4>, scalar_prefetch = 0 : i64, scratch_operands = 0 : i64, tpu.core_type = #tpu.core_type<tc>, window_params = [{transform_indices = @transform_0, window_bounds = array<i64: 1, 8, 32>}, {transform_indices = @transform_1, window_bounds = array<i64: 1, 64, 16>}, {transform_indices = @transform_2, window_bounds = array<i64: 1, 8, 16, 8>}, {pipeline_mode = #tpu.pipeline_mode<synchronous>, transform_indices = @transform_3, window_bounds = array<i64: 3, 16, 32>}, {pipeline_mode = #tpu.pipeline_mode<synchronous>, transform_indices = @transform_4, window_bounds = array<i64: 3, 16, 32>}, {pipeline_mode = #tpu.pipeline_mode<synchronous>, transform_indices = @transform_5, window_bounds = array<i64: 3, 32, 32>}, {pipeline_mode = #tpu.pipeline_mode<synchronous>, transform_indices = @transform_6, window_bounds = array<i64: 3, 32, 32>}, {pipeline_mode = #tpu.pipeline_mode<synchronous>, transform_indices = @transform_7, window_bounds = array<i64: 3, 1, 32>}, {pipeline_mode = #tpu.pipeline_mode<synchronous>, transform_indices = @transform_8, window_bounds = array<i64: 3, 32, 32>}, {pipeline_mode = #tpu.pipeline_mode<synchronous>, transform_indices = @transform_9, window_bounds = array<i64: 3, 1, 32>}, {pipeline_mode = #tpu.pipeline_mode<synchronous>, transform_indices = @transform_10, window_bounds = array<i64: 32, 32>}, {pipeline_mode = #tpu.pipeline_mode<synchronous>, transform_indices = @transform_11, window_bounds = array<i64: 1, 32>}, {pipeline_mode = #tpu.pipeline_mode<synchronous>, transform_indices = @transform_12, window_bounds = array<i64: 32, 1>}, {pipeline_mode = #tpu.pipeline_mode<synchronous>, transform_indices = @transform_13, window_bounds = array<i64: 1, 1>}, {transform_indices = @transform_14, window_bounds = array<i64: 1, 1, 1>}, {transform_indices = @transform_15, window_bounds = array<i64: 1, 8, 32>}, {transform_indices = @transform_16, window_bounds = array<i64: 1, 8, 16, 32>}]} {
    %c0 = arith.constant 0 : index
    %c0_0 = arith.constant 0 : index
    %c0_1 = arith.constant 0 : index
    %0 = vector.load %arg2[%c0, %c0_0, %c0_1] : memref<1x64x16xbf16, #tpu.memory_space<vmem>>, vector<1x64x16xbf16>
    %1 = vector.shape_cast %0 : vector<1x64x16xbf16> to vector<64x16xbf16>
    %c0_2 = arith.constant 0 : index
    %c0_3 = arith.constant 0 : index
    %c0_4 = arith.constant 0 : index
    %c0_5 = arith.constant 0 : index
    %2 = vector.load %arg3[%c0_2, %c0_3, %c0_4, %c0_5] : memref<1x8x16x8xbf16, #tpu.memory_space<vmem>>, vector<1x8x16x8xbf16>
    %3 = vector.shape_cast %2 : vector<1x8x16x8xbf16> to vector<8x16x8xbf16>
    %c0_6 = arith.constant 0 : index
    %c0_7 = arith.constant 0 : index
    %c0_8 = arith.constant 0 : index
    %4 = vector.load %arg1[%c0_6, %c0_7, %c0_8] : memref<1x8x32xf32, #tpu.memory_space<vmem>>, vector<1x8x32xf32>
    %5 = vector.shape_cast %4 : vector<1x8x32xf32> to vector<8x32xf32>
    %cst = arith.constant 0.000000e+00 : f32
    %6 = vector.broadcast %cst : f32 to vector<8x16x32xf32>
    %c0_9 = arith.constant 0 : index
    %c0_10 = arith.constant 0 : index
    %c0_11 = arith.constant 0 : index
    %7 = vector.load %arg4[%c0_9, %c0_10, %c0_11] : memref<3x16x32xbf16, #tpu.memory_space<vmem>>, vector<1x16x32xbf16>
    %8 = vector.shape_cast %7 : vector<1x16x32xbf16> to vector<16x32xbf16>
    %cst_12 = arith.constant dense<0.000000e+00> : vector<64x32xf32>
    %9 = tpu.matmul %1, %8, %cst_12 {dimension_numbers = #tpu.dot_dimension_numbers<[1], [0], [0], [1], [0, 0, 1, 1], [], []>} : vector<64x16xbf16>, vector<16x32xbf16>, vector<64x32xf32> -> vector<64x32xf32>
    %10 = vector.shape_cast %9 : vector<64x32xf32> to vector<8x8x32xf32>
    %c0_13 = arith.constant 0 : index
    %c0_14 = arith.constant 0 : index
    %c0_15 = arith.constant 0 : index
    %11 = vector.load %arg5[%c0_13, %c0_14, %c0_15] : memref<3x16x32xbf16, #tpu.memory_space<vmem>>, vector<1x16x32xbf16>
    %12 = vector.shape_cast %11 : vector<1x16x32xbf16> to vector<16x32xbf16>
    %cst_16 = arith.constant dense<0.000000e+00> : vector<64x32xf32>
    %13 = tpu.matmul %1, %12, %cst_16 {dimension_numbers = #tpu.dot_dimension_numbers<[1], [0], [0], [1], [0, 0, 1, 1], [], []>} : vector<64x16xbf16>, vector<16x32xbf16>, vector<64x32xf32> -> vector<64x32xf32>
    %14 = vector.shape_cast %13 : vector<64x32xf32> to vector<8x8x32xf32>
    %15 = arith.truncf %5 : vector<8x32xf32> to vector<8x32xbf16>
    %c0_17 = arith.constant 0 : index
    %c0_18 = arith.constant 0 : index
    %c0_19 = arith.constant 0 : index
    %16 = vector.load %arg6[%c0_17, %c0_18, %c0_19] : memref<3x32x32xbf16, #tpu.memory_space<vmem>>, vector<1x32x32xbf16>
    %17 = vector.shape_cast %16 : vector<1x32x32xbf16> to vector<32x32xbf16>
    %cst_20 = arith.constant dense<0.000000e+00> : vector<8x32xf32>
    %18 = tpu.matmul %15, %17, %cst_20 {dimension_numbers = #tpu.dot_dimension_numbers<[1], [0], [0], [1], [0, 0, 1, 1], [], []>} : vector<8x32xbf16>, vector<32x32xbf16>, vector<8x32xf32> -> vector<8x32xf32>
    %19 = vector.shape_cast %18 : vector<8x32xf32> to vector<1x8x32xf32>
    %20 = vector.broadcast %19 : vector<1x8x32xf32> to vector<8x8x32xf32>
    %21 = arith.mulf %10, %20 : vector<8x8x32xf32>
    %cst_21 = arith.constant dense<0.000000e+00> : vector<8x32xf32>
    %22 = vector.multi_reduction <add>, %21, %cst_21 [1] : vector<8x8x32xf32> to vector<8x32xf32>
    %23 = arith.truncf %22 : vector<8x32xf32> to vector<8x32xbf16>
    %c0_22 = arith.constant 0 : index
    %c0_23 = arith.constant 0 : index
    %c0_24 = arith.constant 0 : index
    %24 = vector.load %arg7[%c0_22, %c0_23, %c0_24] : memref<3x32x32xbf16, #tpu.memory_space<vmem>>, vector<1x32x32xbf16>
    %25 = vector.shape_cast %24 : vector<1x32x32xbf16> to vector<32x32xbf16>
    %cst_25 = arith.constant dense<0.000000e+00> : vector<8x32xf32>
    %26 = tpu.matmul %23, %25, %cst_25 {dimension_numbers = #tpu.dot_dimension_numbers<[1], [0], [0], [1], [0, 0, 1, 1], [], []>} : vector<8x32xbf16>, vector<32x32xbf16>, vector<8x32xf32> -> vector<8x32xf32>
    %c0_26 = arith.constant 0 : index
    %c0_27 = arith.constant 0 : index
    %c0_28 = arith.constant 0 : index
    %27 = vector.load %arg8[%c0_26, %c0_27, %c0_28] : memref<3x1x32xf32, #tpu.memory_space<vmem>>, vector<1x1x32xf32>
    %28 = vector.shape_cast %27 : vector<1x1x32xf32> to vector<1x32xf32>
    %29 = vector.broadcast %28 : vector<1x32xf32> to vector<8x32xf32>
    %30 = arith.addf %26, %29 : vector<8x32xf32>
    %cst_29 = arith.constant 0.000000e+00 : f32
    %31 = vector.broadcast %cst_29 : f32 to vector<8x32xf32>
    %32 = arith.subf %31, %30 : vector<8x32xf32>
    %33 = math.exp %32 : vector<8x32xf32>
    %cst_30 = arith.constant 1.000000e+00 : f32
    %34 = vector.broadcast %cst_30 : f32 to vector<8x32xf32>
    %35 = arith.addf %34, %33 : vector<8x32xf32>
    %36 = arith.divf %30, %35 : vector<8x32xf32>
    %37 = arith.truncf %36 : vector<8x32xf32> to vector<8x32xbf16>
    %c0_31 = arith.constant 0 : index
    %c0_32 = arith.constant 0 : index
    %c0_33 = arith.constant 0 : index
    %38 = vector.load %arg9[%c0_31, %c0_32, %c0_33] : memref<3x32x32xbf16, #tpu.memory_space<vmem>>, vector<1x32x32xbf16>
    %39 = vector.shape_cast %38 : vector<1x32x32xbf16> to vector<32x32xbf16>
    %cst_34 = arith.constant dense<0.000000e+00> : vector<8x32xf32>
    %40 = tpu.matmul %37, %39, %cst_34 {dimension_numbers = #tpu.dot_dimension_numbers<[1], [0], [0], [1], [0, 0, 1, 1], [], []>} : vector<8x32xbf16>, vector<32x32xbf16>, vector<8x32xf32> -> vector<8x32xf32>
    %c0_35 = arith.constant 0 : index
    %c0_36 = arith.constant 0 : index
    %c0_37 = arith.constant 0 : index
    %41 = vector.load %arg10[%c0_35, %c0_36, %c0_37] : memref<3x1x32xf32, #tpu.memory_space<vmem>>, vector<1x1x32xf32>
    %42 = vector.shape_cast %41 : vector<1x1x32xf32> to vector<1x32xf32>
    %43 = vector.broadcast %42 : vector<1x32xf32> to vector<8x32xf32>
    %44 = arith.addf %40, %43 : vector<8x32xf32>
    %45 = arith.addf %5, %44 : vector<8x32xf32>
    %46 = vector.broadcast %19 : vector<1x8x32xf32> to vector<8x8x32xf32>
    %47 = arith.mulf %14, %46 : vector<8x8x32xf32>
    %48 = arith.truncf %47 : vector<8x8x32xf32> to vector<8x8x32xbf16>
    "tpu.trace_start"() <{level = 10 : i32, message = "icj,ijf->icf"}> : () -> ()
    %cst_38 = arith.constant dense<0.000000e+00> : vector<8x16x32xf32>
    %49 = tpu.matmul %3, %48, %cst_38 {dimension_numbers = #tpu.dot_dimension_numbers<[2], [1], [1], [2], [0, 0, 0, 1, 1, 2], [0], [0]>} : vector<8x16x8xbf16>, vector<8x8x32xbf16>, vector<8x16x32xf32> -> vector<8x16x32xf32>
    "tpu.trace_stop"() : () -> ()
    %50 = arith.addf %6, %49 : vector<8x16x32xf32>
    %c1 = arith.constant 1 : index
    %c0_39 = arith.constant 0 : index
    %c0_40 = arith.constant 0 : index
    %51 = vector.load %arg4[%c1, %c0_39, %c0_40] : memref<3x16x32xbf16, #tpu.memory_space<vmem>>, vector<1x16x32xbf16>
    %52 = vector.shape_cast %51 : vector<1x16x32xbf16> to vector<16x32xbf16>
    %cst_41 = arith.constant dense<0.000000e+00> : vector<64x32xf32>
    %53 = tpu.matmul %1, %52, %cst_41 {dimension_numbers = #tpu.dot_dimension_numbers<[1], [0], [0], [1], [0, 0, 1, 1], [], []>} : vector<64x16xbf16>, vector<16x32xbf16>, vector<64x32xf32> -> vector<64x32xf32>
    %54 = vector.shape_cast %53 : vector<64x32xf32> to vector<8x8x32xf32>
    %c1_42 = arith.constant 1 : index
    %c0_43 = arith.constant 0 : index
    %c0_44 = arith.constant 0 : index
    %55 = vector.load %arg5[%c1_42, %c0_43, %c0_44] : memref<3x16x32xbf16, #tpu.memory_space<vmem>>, vector<1x16x32xbf16>
    %56 = vector.shape_cast %55 : vector<1x16x32xbf16> to vector<16x32xbf16>
    %cst_45 = arith.constant dense<0.000000e+00> : vector<64x32xf32>
    %57 = tpu.matmul %1, %56, %cst_45 {dimension_numbers = #tpu.dot_dimension_numbers<[1], [0], [0], [1], [0, 0, 1, 1], [], []>} : vector<64x16xbf16>, vector<16x32xbf16>, vector<64x32xf32> -> vector<64x32xf32>
    %58 = vector.shape_cast %57 : vector<64x32xf32> to vector<8x8x32xf32>
    %59 = arith.truncf %45 : vector<8x32xf32> to vector<8x32xbf16>
    %c1_46 = arith.constant 1 : index
    %c0_47 = arith.constant 0 : index
    %c0_48 = arith.constant 0 : index
    %60 = vector.load %arg6[%c1_46, %c0_47, %c0_48] : memref<3x32x32xbf16, #tpu.memory_space<vmem>>, vector<1x32x32xbf16>
    %61 = vector.shape_cast %60 : vector<1x32x32xbf16> to vector<32x32xbf16>
    %cst_49 = arith.constant dense<0.000000e+00> : vector<8x32xf32>
    %62 = tpu.matmul %59, %61, %cst_49 {dimension_numbers = #tpu.dot_dimension_numbers<[1], [0], [0], [1], [0, 0, 1, 1], [], []>} : vector<8x32xbf16>, vector<32x32xbf16>, vector<8x32xf32> -> vector<8x32xf32>
    %63 = vector.shape_cast %62 : vector<8x32xf32> to vector<1x8x32xf32>
    %64 = vector.broadcast %63 : vector<1x8x32xf32> to vector<8x8x32xf32>
    %65 = arith.mulf %54, %64 : vector<8x8x32xf32>
    %cst_50 = arith.constant dense<0.000000e+00> : vector<8x32xf32>
    %66 = vector.multi_reduction <add>, %65, %cst_50 [1] : vector<8x8x32xf32> to vector<8x32xf32>
    %67 = arith.truncf %66 : vector<8x32xf32> to vector<8x32xbf16>
    %c1_51 = arith.constant 1 : index
    %c0_52 = arith.constant 0 : index
    %c0_53 = arith.constant 0 : index
    %68 = vector.load %arg7[%c1_51, %c0_52, %c0_53] : memref<3x32x32xbf16, #tpu.memory_space<vmem>>, vector<1x32x32xbf16>
    %69 = vector.shape_cast %68 : vector<1x32x32xbf16> to vector<32x32xbf16>
    %cst_54 = arith.constant dense<0.000000e+00> : vector<8x32xf32>
    %70 = tpu.matmul %67, %69, %cst_54 {dimension_numbers = #tpu.dot_dimension_numbers<[1], [0], [0], [1], [0, 0, 1, 1], [], []>} : vector<8x32xbf16>, vector<32x32xbf16>, vector<8x32xf32> -> vector<8x32xf32>
    %c1_55 = arith.constant 1 : index
    %c0_56 = arith.constant 0 : index
    %c0_57 = arith.constant 0 : index
    %71 = vector.load %arg8[%c1_55, %c0_56, %c0_57] : memref<3x1x32xf32, #tpu.memory_space<vmem>>, vector<1x1x32xf32>
    %72 = vector.shape_cast %71 : vector<1x1x32xf32> to vector<1x32xf32>
    %73 = vector.broadcast %72 : vector<1x32xf32> to vector<8x32xf32>
    %74 = arith.addf %70, %73 : vector<8x32xf32>
    %cst_58 = arith.constant 0.000000e+00 : f32
    %75 = vector.broadcast %cst_58 : f32 to vector<8x32xf32>
    %76 = arith.subf %75, %74 : vector<8x32xf32>
    %77 = math.exp %76 : vector<8x32xf32>
    %cst_59 = arith.constant 1.000000e+00 : f32
    %78 = vector.broadcast %cst_59 : f32 to vector<8x32xf32>
    %79 = arith.addf %78, %77 : vector<8x32xf32>
    %80 = arith.divf %74, %79 : vector<8x32xf32>
    %81 = arith.truncf %80 : vector<8x32xf32> to vector<8x32xbf16>
    %c1_60 = arith.constant 1 : index
    %c0_61 = arith.constant 0 : index
    %c0_62 = arith.constant 0 : index
    %82 = vector.load %arg9[%c1_60, %c0_61, %c0_62] : memref<3x32x32xbf16, #tpu.memory_space<vmem>>, vector<1x32x32xbf16>
    %83 = vector.shape_cast %82 : vector<1x32x32xbf16> to vector<32x32xbf16>
    %cst_63 = arith.constant dense<0.000000e+00> : vector<8x32xf32>
    %84 = tpu.matmul %81, %83, %cst_63 {dimension_numbers = #tpu.dot_dimension_numbers<[1], [0], [0], [1], [0, 0, 1, 1], [], []>} : vector<8x32xbf16>, vector<32x32xbf16>, vector<8x32xf32> -> vector<8x32xf32>
    %c1_64 = arith.constant 1 : index
    %c0_65 = arith.constant 0 : index
    %c0_66 = arith.constant 0 : index
    %85 = vector.load %arg10[%c1_64, %c0_65, %c0_66] : memref<3x1x32xf32, #tpu.memory_space<vmem>>, vector<1x1x32xf32>
    %86 = vector.shape_cast %85 : vector<1x1x32xf32> to vector<1x32xf32>
    %87 = vector.broadcast %86 : vector<1x32xf32> to vector<8x32xf32>
    %88 = arith.addf %84, %87 : vector<8x32xf32>
    %89 = arith.addf %45, %88 : vector<8x32xf32>
    %90 = vector.broadcast %63 : vector<1x8x32xf32> to vector<8x8x32xf32>
    %91 = arith.mulf %58, %90 : vector<8x8x32xf32>
    %92 = arith.truncf %91 : vector<8x8x32xf32> to vector<8x8x32xbf16>
    "tpu.trace_start"() <{level = 10 : i32, message = "icj,ijf->icf"}> : () -> ()
    %cst_67 = arith.constant dense<0.000000e+00> : vector<8x16x32xf32>
    %93 = tpu.matmul %3, %92, %cst_67 {dimension_numbers = #tpu.dot_dimension_numbers<[2], [1], [1], [2], [0, 0, 0, 1, 1, 2], [0], [0]>} : vector<8x16x8xbf16>, vector<8x8x32xbf16>, vector<8x16x32xf32> -> vector<8x16x32xf32>
    "tpu.trace_stop"() : () -> ()
    %94 = arith.addf %50, %93 : vector<8x16x32xf32>
    %c2 = arith.constant 2 : index
    %c0_68 = arith.constant 0 : index
    %c0_69 = arith.constant 0 : index
    %95 = vector.load %arg4[%c2, %c0_68, %c0_69] : memref<3x16x32xbf16, #tpu.memory_space<vmem>>, vector<1x16x32xbf16>
    %96 = vector.shape_cast %95 : vector<1x16x32xbf16> to vector<16x32xbf16>
    %cst_70 = arith.constant dense<0.000000e+00> : vector<64x32xf32>
    %97 = tpu.matmul %1, %96, %cst_70 {dimension_numbers = #tpu.dot_dimension_numbers<[1], [0], [0], [1], [0, 0, 1, 1], [], []>} : vector<64x16xbf16>, vector<16x32xbf16>, vector<64x32xf32> -> vector<64x32xf32>
    %98 = vector.shape_cast %97 : vector<64x32xf32> to vector<8x8x32xf32>
    %c2_71 = arith.constant 2 : index
    %c0_72 = arith.constant 0 : index
    %c0_73 = arith.constant 0 : index
    %99 = vector.load %arg5[%c2_71, %c0_72, %c0_73] : memref<3x16x32xbf16, #tpu.memory_space<vmem>>, vector<1x16x32xbf16>
    %100 = vector.shape_cast %99 : vector<1x16x32xbf16> to vector<16x32xbf16>
    %cst_74 = arith.constant dense<0.000000e+00> : vector<64x32xf32>
    %101 = tpu.matmul %1, %100, %cst_74 {dimension_numbers = #tpu.dot_dimension_numbers<[1], [0], [0], [1], [0, 0, 1, 1], [], []>} : vector<64x16xbf16>, vector<16x32xbf16>, vector<64x32xf32> -> vector<64x32xf32>
    %102 = vector.shape_cast %101 : vector<64x32xf32> to vector<8x8x32xf32>
    %103 = arith.truncf %89 : vector<8x32xf32> to vector<8x32xbf16>
    %c2_75 = arith.constant 2 : index
    %c0_76 = arith.constant 0 : index
    %c0_77 = arith.constant 0 : index
    %104 = vector.load %arg6[%c2_75, %c0_76, %c0_77] : memref<3x32x32xbf16, #tpu.memory_space<vmem>>, vector<1x32x32xbf16>
    %105 = vector.shape_cast %104 : vector<1x32x32xbf16> to vector<32x32xbf16>
    %cst_78 = arith.constant dense<0.000000e+00> : vector<8x32xf32>
    %106 = tpu.matmul %103, %105, %cst_78 {dimension_numbers = #tpu.dot_dimension_numbers<[1], [0], [0], [1], [0, 0, 1, 1], [], []>} : vector<8x32xbf16>, vector<32x32xbf16>, vector<8x32xf32> -> vector<8x32xf32>
    %107 = vector.shape_cast %106 : vector<8x32xf32> to vector<1x8x32xf32>
    %108 = vector.broadcast %107 : vector<1x8x32xf32> to vector<8x8x32xf32>
    %109 = arith.mulf %98, %108 : vector<8x8x32xf32>
    %cst_79 = arith.constant dense<0.000000e+00> : vector<8x32xf32>
    %110 = vector.multi_reduction <add>, %109, %cst_79 [1] : vector<8x8x32xf32> to vector<8x32xf32>
    %111 = arith.truncf %110 : vector<8x32xf32> to vector<8x32xbf16>
    %c2_80 = arith.constant 2 : index
    %c0_81 = arith.constant 0 : index
    %c0_82 = arith.constant 0 : index
    %112 = vector.load %arg7[%c2_80, %c0_81, %c0_82] : memref<3x32x32xbf16, #tpu.memory_space<vmem>>, vector<1x32x32xbf16>
    %113 = vector.shape_cast %112 : vector<1x32x32xbf16> to vector<32x32xbf16>
    %cst_83 = arith.constant dense<0.000000e+00> : vector<8x32xf32>
    %114 = tpu.matmul %111, %113, %cst_83 {dimension_numbers = #tpu.dot_dimension_numbers<[1], [0], [0], [1], [0, 0, 1, 1], [], []>} : vector<8x32xbf16>, vector<32x32xbf16>, vector<8x32xf32> -> vector<8x32xf32>
    %c2_84 = arith.constant 2 : index
    %c0_85 = arith.constant 0 : index
    %c0_86 = arith.constant 0 : index
    %115 = vector.load %arg8[%c2_84, %c0_85, %c0_86] : memref<3x1x32xf32, #tpu.memory_space<vmem>>, vector<1x1x32xf32>
    %116 = vector.shape_cast %115 : vector<1x1x32xf32> to vector<1x32xf32>
    %117 = vector.broadcast %116 : vector<1x32xf32> to vector<8x32xf32>
    %118 = arith.addf %114, %117 : vector<8x32xf32>
    %cst_87 = arith.constant 0.000000e+00 : f32
    %119 = vector.broadcast %cst_87 : f32 to vector<8x32xf32>
    %120 = arith.subf %119, %118 : vector<8x32xf32>
    %121 = math.exp %120 : vector<8x32xf32>
    %cst_88 = arith.constant 1.000000e+00 : f32
    %122 = vector.broadcast %cst_88 : f32 to vector<8x32xf32>
    %123 = arith.addf %122, %121 : vector<8x32xf32>
    %124 = arith.divf %118, %123 : vector<8x32xf32>
    %125 = arith.truncf %124 : vector<8x32xf32> to vector<8x32xbf16>
    %c2_89 = arith.constant 2 : index
    %c0_90 = arith.constant 0 : index
    %c0_91 = arith.constant 0 : index
    %126 = vector.load %arg9[%c2_89, %c0_90, %c0_91] : memref<3x32x32xbf16, #tpu.memory_space<vmem>>, vector<1x32x32xbf16>
    %127 = vector.shape_cast %126 : vector<1x32x32xbf16> to vector<32x32xbf16>
    %cst_92 = arith.constant dense<0.000000e+00> : vector<8x32xf32>
    %128 = tpu.matmul %125, %127, %cst_92 {dimension_numbers = #tpu.dot_dimension_numbers<[1], [0], [0], [1], [0, 0, 1, 1], [], []>} : vector<8x32xbf16>, vector<32x32xbf16>, vector<8x32xf32> -> vector<8x32xf32>
    %c2_93 = arith.constant 2 : index
    %c0_94 = arith.constant 0 : index
    %c0_95 = arith.constant 0 : index
    %129 = vector.load %arg10[%c2_93, %c0_94, %c0_95] : memref<3x1x32xf32, #tpu.memory_space<vmem>>, vector<1x1x32xf32>
    %130 = vector.shape_cast %129 : vector<1x1x32xf32> to vector<1x32xf32>
    %131 = vector.broadcast %130 : vector<1x32xf32> to vector<8x32xf32>
    %132 = arith.addf %128, %131 : vector<8x32xf32>
    %133 = arith.addf %89, %132 : vector<8x32xf32>
    %134 = vector.broadcast %107 : vector<1x8x32xf32> to vector<8x8x32xf32>
    %135 = arith.mulf %102, %134 : vector<8x8x32xf32>
    %136 = arith.truncf %135 : vector<8x8x32xf32> to vector<8x8x32xbf16>
    "tpu.trace_start"() <{level = 10 : i32, message = "icj,ijf->icf"}> : () -> ()
    %cst_96 = arith.constant dense<0.000000e+00> : vector<8x16x32xf32>
    %137 = tpu.matmul %3, %136, %cst_96 {dimension_numbers = #tpu.dot_dimension_numbers<[2], [1], [1], [2], [0, 0, 0, 1, 1, 2], [0], [0]>} : vector<8x16x8xbf16>, vector<8x8x32xbf16>, vector<8x16x32xf32> -> vector<8x16x32xf32>
    "tpu.trace_stop"() : () -> ()
    %138 = arith.addf %94, %137 : vector<8x16x32xf32>
    %139 = arith.truncf %133 : vector<8x32xf32> to vector<8x32xbf16>
    %c0_97 = arith.constant 0 : index
    %c0_98 = arith.constant 0 : index
    %140 = vector.load %arg11[%c0_97, %c0_98] : memref<32x32xbf16, #tpu.memory_space<vmem>>, vector<32x32xbf16>
    %cst_99 = arith.constant dense<0.000000e+00> : vector<8x32xf32>
    %141 = tpu.matmul %139, %140, %cst_99 {dimension_numbers = #tpu.dot_dimension_numbers<[1], [0], [0], [1], [0, 0, 1, 1], [], []>} : vector<8x32xbf16>, vector<32x32xbf16>, vector<8x32xf32> -> vector<8x32xf32>
    %c0_100 = arith.constant 0 : index
    %c0_101 = arith.constant 0 : index
    %142 = vector.load %arg12[%c0_100, %c0_101] : memref<1x32xf32, #tpu.memory_space<vmem>>, vector<1x32xf32>
    %143 = vector.broadcast %142 : vector<1x32xf32> to vector<8x32xf32>
    %144 = arith.addf %141, %143 : vector<8x32xf32>
    %cst_102 = arith.constant 0.000000e+00 : f32
    %145 = vector.broadcast %cst_102 : f32 to vector<8x32xf32>
    %146 = arith.subf %145, %144 : vector<8x32xf32>
    %147 = math.exp %146 : vector<8x32xf32>
    %cst_103 = arith.constant 1.000000e+00 : f32
    %148 = vector.broadcast %cst_103 : f32 to vector<8x32xf32>
    %149 = arith.addf %148, %147 : vector<8x32xf32>
    %150 = arith.divf %144, %149 : vector<8x32xf32>
    %151 = arith.truncf %150 : vector<8x32xf32> to vector<8x32xbf16>
    %c0_104 = arith.constant 0 : index
    %c0_105 = arith.constant 0 : index
    %152 = vector.load %arg13[%c0_104, %c0_105] : memref<32x1xbf16, #tpu.memory_space<vmem>>, vector<32x1xbf16>
    %cst_106 = arith.constant dense<0.000000e+00> : vector<8x1xf32>
    %153 = tpu.matmul %151, %152, %cst_106 {dimension_numbers = #tpu.dot_dimension_numbers<[1], [0], [0], [1], [0, 0, 1, 1], [], []>} : vector<8x32xbf16>, vector<32x1xbf16>, vector<8x1xf32> -> vector<8x1xf32>
    %c0_107 = arith.constant 0 : index
    %c0_108 = arith.constant 0 : index
    %154 = vector.load %arg14[%c0_107, %c0_108] : memref<1x1xf32, #tpu.memory_space<vmem>>, vector<1x1xf32>
    %155 = vector.broadcast %154 : vector<1x1xf32> to vector<8x1xf32>
    %156 = arith.addf %153, %155 : vector<8x1xf32>
    %cst_109 = arith.constant dense<0.000000e+00> : vector<1xf32>
    %157 = vector.multi_reduction <add>, %156, %cst_109 [0] : vector<8x1xf32> to vector<1xf32>
    %158 = vector.shape_cast %157 : vector<1xf32> to vector<1x1xf32>
    %c0_110 = arith.constant 0 : index
    %c0_111 = arith.constant 0 : index
    %c0_112 = arith.constant 0 : index
    %159 = vector.load %arg15[%c0_110, %c0_111, %c0_112] : memref<1x1x1xf32, #tpu.memory_space<vmem>>, vector<1x1x1xf32>
    %160 = vector.shape_cast %159 : vector<1x1x1xf32> to vector<1x1xf32>
    %161 = vector.shape_cast %158 : vector<1x1xf32> to vector<1x1x1xf32>
    tpu.vector_store %arg15[%c0_110, %c0_111, %c0_112], %161 {strides = array<i32>} : memref<1x1x1xf32, #tpu.memory_space<vmem>>, vector<1x1x1xf32>,
    %c0_113 = arith.constant 0 : index
    %c0_114 = arith.constant 0 : index
    %c0_115 = arith.constant 0 : index
    %162 = vector.load %arg16[%c0_113, %c0_114, %c0_115] : memref<1x8x32xf32, #tpu.memory_space<vmem>>, vector<1x8x32xf32>
    %163 = vector.shape_cast %162 : vector<1x8x32xf32> to vector<8x32xf32>
    %164 = vector.shape_cast %133 : vector<8x32xf32> to vector<1x8x32xf32>
    tpu.vector_store %arg16[%c0_113, %c0_114, %c0_115], %164 {strides = array<i32>} : memref<1x8x32xf32, #tpu.memory_space<vmem>>, vector<1x8x32xf32>,
    %c0_116 = arith.constant 0 : index
    %c0_117 = arith.constant 0 : index
    %c0_118 = arith.constant 0 : index
    %c0_119 = arith.constant 0 : index
    %165 = vector.load %arg17[%c0_116, %c0_117, %c0_118, %c0_119] : memref<1x8x16x32xf32, #tpu.memory_space<vmem>>, vector<1x8x16x32xf32>
    %166 = vector.shape_cast %165 : vector<1x8x16x32xf32> to vector<8x16x32xf32>
    %167 = vector.shape_cast %138 : vector<8x16x32xf32> to vector<1x8x16x32xf32>
    tpu.vector_store %arg17[%c0_116, %c0_117, %c0_118, %c0_119], %167 {strides = array<i32>} : memref<1x8x16x32xf32, #tpu.memory_space<vmem>>, vector<1x8x16x32xf32>,
    return
  }
  func.func @transform_0(%arg0: i32) -> (i32, i32, i32) {
    %c0_i32 = arith.constant 0 : i32
    %c0_i32_0 = arith.constant 0 : i32
    %c0_i32_1 = arith.constant 0 : i32
    return %arg0, %c0_i32, %c0_i32_0 : i32, i32, i32
  }
  func.func @transform_1(%arg0: i32) -> (i32, i32, i32) {
    %c0_i32 = arith.constant 0 : i32
    %c0_i32_0 = arith.constant 0 : i32
    %c0_i32_1 = arith.constant 0 : i32
    return %arg0, %c0_i32, %c0_i32_0 : i32, i32, i32
  }
  func.func @transform_2(%arg0: i32) -> (i32, i32, i32, i32) {
    %c0_i32 = arith.constant 0 : i32
    %c0_i32_0 = arith.constant 0 : i32
    %c0_i32_1 = arith.constant 0 : i32
    %c0_i32_2 = arith.constant 0 : i32
    return %arg0, %c0_i32, %c0_i32_0, %c0_i32_1 : i32, i32, i32, i32
  }
  func.func @transform_3(%arg0: i32) -> (i32, i32, i32) {
    %c0_i32 = arith.constant 0 : i32
    %c0_i32_0 = arith.constant 0 : i32
    %c0_i32_1 = arith.constant 0 : i32
    %c0_i32_2 = arith.constant 0 : i32
    return %c0_i32, %c0_i32_0, %c0_i32_1 : i32, i32, i32
  }
  func.func @transform_4(%arg0: i32) -> (i32, i32, i32) {
    %c0_i32 = arith.constant 0 : i32
    %c0_i32_0 = arith.constant 0 : i32
    %c0_i32_1 = arith.constant 0 : i32
    %c0_i32_2 = arith.constant 0 : i32
    return %c0_i32, %c0_i32_0, %c0_i32_1 : i32, i32, i32
  }
  func.func @transform_5(%arg0: i32) -> (i32, i32, i32) {
    %c0_i32 = arith.constant 0 : i32
    %c0_i32_0 = arith.constant 0 : i32
    %c0_i32_1 = arith.constant 0 : i32
    %c0_i32_2 = arith.constant 0 : i32
    return %c0_i32, %c0_i32_0, %c0_i32_1 : i32, i32, i32
  }
  func.func @transform_6(%arg0: i32) -> (i32, i32, i32) {
    %c0_i32 = arith.constant 0 : i32
    %c0_i32_0 = arith.constant 0 : i32
    %c0_i32_1 = arith.constant 0 : i32
    %c0_i32_2 = arith.constant 0 : i32
    return %c0_i32, %c0_i32_0, %c0_i32_1 : i32, i32, i32
  }
  func.func @transform_7(%arg0: i32) -> (i32, i32, i32) {
    %c0_i32 = arith.constant 0 : i32
    %c0_i32_0 = arith.constant 0 : i32
    %c0_i32_1 = arith.constant 0 : i32
    %c0_i32_2 = arith.constant 0 : i32
    return %c0_i32, %c0_i32_0, %c0_i32_1 : i32, i32, i32
  }
  func.func @transform_8(%arg0: i32) -> (i32, i32, i32) {
    %c0_i32 = arith.constant 0 : i32
    %c0_i32_0 = arith.constant 0 : i32
    %c0_i32_1 = arith.constant 0 : i32
    %c0_i32_2 = arith.constant 0 : i32
    return %c0_i32, %c0_i32_0, %c0_i32_1 : i32, i32, i32
  }
  func.func @transform_9(%arg0: i32) -> (i32, i32, i32) {
    %c0_i32 = arith.constant 0 : i32
    %c0_i32_0 = arith.constant 0 : i32
    %c0_i32_1 = arith.constant 0 : i32
    %c0_i32_2 = arith.constant 0 : i32
    return %c0_i32, %c0_i32_0, %c0_i32_1 : i32, i32, i32
  }
  func.func @transform_10(%arg0: i32) -> (i32, i32) {
    %c0_i32 = arith.constant 0 : i32
    %c0_i32_0 = arith.constant 0 : i32
    %c0_i32_1 = arith.constant 0 : i32
    return %c0_i32, %c0_i32_0 : i32, i32
  }
  func.func @transform_11(%arg0: i32) -> (i32, i32) {
    %c0_i32 = arith.constant 0 : i32
    %c0_i32_0 = arith.constant 0 : i32
    %c0_i32_1 = arith.constant 0 : i32
    return %c0_i32, %c0_i32_0 : i32, i32
  }
  func.func @transform_12(%arg0: i32) -> (i32, i32) {
    %c0_i32 = arith.constant 0 : i32
    %c0_i32_0 = arith.constant 0 : i32
    %c0_i32_1 = arith.constant 0 : i32
    return %c0_i32, %c0_i32_0 : i32, i32
  }
  func.func @transform_13(%arg0: i32) -> (i32, i32) {
    %c0_i32 = arith.constant 0 : i32
    %c0_i32_0 = arith.constant 0 : i32
    %c0_i32_1 = arith.constant 0 : i32
    return %c0_i32, %c0_i32_0 : i32, i32
  }
  func.func @transform_14(%arg0: i32) -> (i32, i32, i32) {
    %c0_i32 = arith.constant 0 : i32
    %c0_i32_0 = arith.constant 0 : i32
    %c0_i32_1 = arith.constant 0 : i32
    return %arg0, %c0_i32, %c0_i32_0 : i32, i32, i32
  }
  func.func @transform_15(%arg0: i32) -> (i32, i32, i32) {
    %c0_i32 = arith.constant 0 : i32
    %c0_i32_0 = arith.constant 0 : i32
    %c0_i32_1 = arith.constant 0 : i32
    return %arg0, %c0_i32, %c0_i32_0 : i32, i32, i32
  }
  func.func @transform_16(%arg0: i32) -> (i32, i32, i32, i32) {
    %c0_i32 = arith.constant 0 : i32
    %c0_i32_0 = arith.constant 0 : i32
    %c0_i32_1 = arith.constant 0 : i32
    %c0_i32_2 = arith.constant 0 : i32
    return %arg0, %c0_i32, %c0_i32_0, %c0_i32_1 : i32, i32, i32, i32
  }
}

</mosaic_0001>

<bundles_post_ra>
// kernel: detanet_forward.1
= control target key start
LH: loop header
LB: loop body
LE: loop exit
PB: predicated region body
PF: predicated region fallthrough
CT: control target
= control target key end

     0   :  { %s5181_s0 = inlined_call_operand.vmem [shape: f32[4,8,32], index: 0, kind: input, shape index: {}]   ;;  %s5182_s1 = inlined_call_operand.vmem [shape: bf16[4,64,16], index: 1, kind: input, shape index: {}]   ;;  %s5183_s2 = inlined_call_operand.vmem [shape: bf16[4,8,16,8], index: 2, kind: input, shape index: {}]   ;;  %s5184_s3 = inlined_call_operand.vmem [shape: bf16[3,16,32], index: 3, kind: input, shape index: {}]   ;;  %s5185_s4 = inlined_call_operand.vmem [shape: bf16[3,16,32], index: 4, kind: input, shape index: {}]   ;;  %s5186_s5 = inlined_call_operand.vmem [shape: bf16[3,32,32], index: 5, kind: input, shape index: {}]   ;;  %s5187_s6 = inlined_call_operand.vmem [shape: bf16[3,32,32], index: 6, kind: input, shape index: {}]   ;;  %s5188_s7 = inlined_call_operand.vmem [shape: f32[3,1,32], index: 7, kind: input, shape index: {}]   ;;  %s5189_s8 = inlined_call_operand.vmem [shape: bf16[3,32,32], index: 8, kind: input, shape index: {}]   ;;  %s5190_s9 = inlined_call_operand.vmem [shape: f32[3,1,32], index: 9, kind: input, shape index: {}]   ;;  %s5191_s10 = inlined_call_operand.vmem [shape: bf16[32,32], index: 10, kind: input, shape index: {}]   ;;  %s5192_s11 = inlined_call_operand.vmem [shape: f32[1,32], index: 11, kind: input, shape index: {}]   ;;  %s5193_s12 = inlined_call_operand.vmem [shape: bf16[32,1], index: 12, kind: input, shape index: {}]   ;;  %s5194_s13 = inlined_call_operand.<no memory space> [shape: f32[1,1], index: 13, kind: input, shape index: {}]   ;;  %s5195_s14 = inlined_call_operand.vmem [shape: f32[4,1,1], index: 14, kind: output, shape index: {0}]   ;;  %s5196_s15 = inlined_call_operand.hbm [shape: f32[4,8,32], index: 15, kind: output, shape index: {1}]   ;;  %s5197_s16 = inlined_call_operand.vmem [shape: f32[4,8,16,32], index: 16, kind: output, shape index: {2}]  }
   0x1   :  { %5203 = sst [smem:[#allocation11_spill]] %s5181_s0  ;;  %v22_v0 = vstv %s5194_s13 }
   0x2   :  { %5204 = sst [smem:[#allocation12_spill]] %s5182_s1  ;;  %23 = vst [vmem:[#allocation2] sm:$0x1] %v22_v0 }
   0x3   :  { %5205 = sst [smem:[#allocation13_spill]] %s5183_s2 }
   0x4   :  { %24 = vsyncpa [#allocation4], 0 }
   0x5   :  { %26 = vsyncpa [#allocation4 + $0x1], 0  ;;  %s4380_s23 = smov 0   ;;  %s4382_s24 = smov 0  }
   0x6   :  { %s4384_s25 = smov 0   ;;  %s4386_s26 = smov 0  }
   0x7 LB: > { %5206 = sst [smem:[#allocation6_spill]] %s4275_s23  ;;  %s4401_s13 = sadd.s32 4294967295, %s4287_s26   ;;  %s4287_s26 = sphi %s4386_s26, %s5218_s26   ;;  %s4283_s25 = sphi %s4384_s25, %s5220_s25   ;;  %s4279_s24 = sphi %s4382_s24, %s5222_s24   ;;  %s4275_s23 = sphi %s4380_s23, %s5221_s23  }
   0x8   : > { %5207 = sst [smem:[#allocation7_spill]] %s4283_s25  ;;  %s3495_s27 = sadd.s32 4294967294, %s4287_s26  }
   0x9   : > { %s4405_s28 = sadd.s32 1, %s4287_s26   ;;  %s374_s29 = sadd.s32 1, %s4283_s25 }
   0xa   : > { %5208 = sst [smem:[#allocation8_spill]] %s4405_s28  ;;  %s371_s30 = ssub.s32 %s4287_s26, %s4405_s28 }
   0xb   : > { %p384_p0 = scmp.ne.s32.totalorder %s4283_s25, %s4279_s24  ;;  %p372_p1 = scmp.eq.s32.totalorder %s371_s30, 0 }
   0xc   : > { %p385_p2 = scmp.eq.s32.totalorder %s4401_s13, 3  ;;  %p390_p3 = scmp.ne.s32.totalorder %s4279_s24, %s4275_s23 }
   0xd   : > { %p391_p4 = scmp.eq.s32.totalorder %s3495_s27, 3  ;;  %p3498_p7 = scmp.ge.s32.totalorder %s4287_s26, 1 }
   0xe   : > { %s4416_s0 = scalar_select %p372_p1, %s4283_s25, %s374_s29  }
   0xf   : > { %p4418_p5 = por %p385_p2, %p384_p0  ;;  %p4422_p6 = por %p391_p4, %p390_p3 }
  0x10   : > { %5209 = sst [smem:[#allocation9_spill]] %s4416_s0  ;;  %p491_p8 = scmp.lt.s32.totalorder %s4287_s26, 5 }
  0x11   : > { %s5211_s18 = scalar_select %p4422_p6, 1, 0 }
  0x12   : > { %p492_p9 = pnand %p3498_p7, %p491_p8 }
  0x13   : > { %5212 = sst [smem:[#allocation10_spill]] %s5211_s18  ;;  %v4165_v1 = vld [vmem:[%s5184_s3] sm:$0xff] (!%p492_p9)   ;;  %p558_p10 = scmp.lt.s32.totalorder (!%p492_p9), %s4401_s13, 3  ;;  %vm634_vm0 = vcmask (!%p492_p9), 130048   ;;  %v4289_v3 = vmov (!%p492_p9), 0.0   ;;  %v4172_v8 = vld [vmem:[%s5186_s5 + $0x8] sm:$0xff] (!%p492_p9)  }
  0x14   : > { %495 = sbr.rel (%p492_p9) target bundleno = 2635 (0xa4b), region = 76  ;;  %3768 = vmatprep.subr.bf16.mxu0 (!%p492_p9), %v4165_v1  ;;  %v4169_v2 = vld [vmem:[%s5185_s4] sm:$0xff] (!%p492_p9)   ;;  %s5213_s1 = sld [smem:[#allocation12_spill]] (!%p492_p9)  ;;  %vm802_vm1 = vcmask (!%p492_p9), 261120   ;;  %vm4290_vm2 = vmmov (!%p492_p9), 0   ;;  %v4174_v13 = vld [vmem:[%s5187_s6 + $0x8] sm:$0xff] (!%p492_p9)  }
  0x15   : > { %3769 = vmatpush3.bf16.msra.mxu0 (!%p492_p9), %v4165_v1  ;;  %v4168_v4 = vld [vmem:[%s5186_s5] sm:$0xff] (!%p492_p9)   ;;  %3778 = vmatprep.subr.bf16.mxu1 (!%p492_p9), %v4169_v2  ;;  %s5214_s20 = sld [smem:[#allocation11_spill]] (!%p492_p9)  ;;  %s5215_s2 = sld [smem:[#allocation13_spill]] (!%p492_p9)  ;;  %vm945_vm3 = vcmask (!%p492_p9), 1041409   ;;  %vm947_vm4 = vcmask (!%p492_p9), 1042434   ;;  %vm949_vm5 = vcmask (!%p492_p9), 1043459  }
  0x16   : > { %3788 = vmatprep.subr.bf16.mxu0 (!%p492_p9), %v4289_v3  ;;  %3779 = vmatpush3.bf16.msra.mxu1 (!%p492_p9), %v4169_v2  ;;  %v4173_v12 = vld [vmem:[%s5187_s6] sm:$0xff] (!%p492_p9)   ;;  %vm951_vm6 = vcmask (!%p492_p9), 1044484   ;;  %vm953_vm7 = vcmask (!%p492_p9), 1045509   ;;  %vm955_vm8 = vcmask (!%p492_p9), 1046534   ;;  %vm957_vm9 = vcmask (!%p492_p9), 1047559   ;;  %s548_s22 = sand.u32 (!%p492_p9), 1, %s4279_s24  }
  0x17   : > { %3796 = vmatprep.subr.bf16.mxu1 (!%p492_p9), %v4289_v3  ;;  %vm1579_vm10 = vcmask (!%p492_p9), 1043456   ;;  %vm1575_vm11 = vcmask (!%p492_p9), 64512   ;;  %s4291_s18 = smov (!%p492_p9), [#allocation3]  }
  0x1b   : > { %s4433_s21 = scalar_select %p558_p10, %s4401_s13, 3 }
  0x1d   : > { %s3654_s29 = sshll.u32 %s4433_s21, 5  ;;  %s3655_s0 = sshll.u32 %s4433_s21, 6 }
  0x1e   : > { %s4446_s25 = scalar_lea.vmem %s5213_s1, %s3654_s29  ;;  %s3500_s29 = sshll.u32 %s4433_s21, 3 }
  0x1f   : > { %v4449_v5 = vld [vmem:[%s4446_s25] sm:$0xff]   ;;  %v4452_v6 = vld [vmem:[%s4446_s25 + $0x8] sm:$0xff]   ;;  %v4460_v7 = vld [vmem:[%s4446_s25 + $0x10] sm:$0xff]   ;;  %s561_s1 = scalar_lea.vmem %s5214_s20, %s3500_s29  ;;  %s4485_s23 = scalar_lea.vmem %s5215_s2, %s3655_s0 }
  0x20   : > { %3770 = vmatprep.mubr.msk.bf16.mxu0 %vm634_vm0, %v4449_v5  ;;  %3780 = vmatprep.mubr.msk.bf16.mxu1 %vm634_vm0, %v4449_v5  ;;  %v4475_v9 = vld [vmem:[%s4446_s25 + $0x18] sm:$0xff]   ;;  %v4488_v10 = vld [vmem:[%s561_s1] sm:$0xff]  ;;  %s5098_s29 = sshll.u32 %s548_s22, 3  ;;  %s3344_s20 = scalar_lea.sflag [#allocation4], %s548_s22 }
  0x21   : > { %3771 = vmatmul.mubr.msk.bf16.vlgmr.msra.gmra.mrb[0].mxu0 %vm634_vm0, %v4452_v6  ;;  %3781 = vmatmul.mubr.msk.bf16.vlgmr.msra.gmra.mrb[0].mxu1 %vm634_vm0, %v4452_v6  ;;  %v785_v11 = vpack.c.bf16 %v4488_v10, %v4488_v10  ;;  %s550_s30 = scalar_lea.vmem [#allocation3], %s5098_s29  ;;  %s4229_s0 = sshll.u32 %s4291_s18, 4  ;;  %s4230_s0 = int_to_ptr.vmem [resolvable:$false] %s4229_s0 }
  0x22   : > { %3789 = vmatpush3.bf16.msra.mxu0 %v4168_v4  ;;  %3774 = vmatprep.mubr.msk.bf16.mxu0 %vm634_vm0, %v4460_v7  ;;  %s4231_s2 = scalar_lea.vmem %s4230_s0, 256 }
  0x23   : > { %3790 = vmatprep.subr.bf16.mxu0 %v4289_v3  ;;  %3784 = vmatprep.mubr.msk.bf16.mxu1 %vm634_vm0, %v4460_v7 }
  0x24   : > { %3797 = vmatpush3.bf16.msra.mxu1 %v4173_v12 }
  0x25   : > { %3798 = vmatprep.subr.bf16.mxu1 %v4289_v3 }
  0x26   : > { %3791 = vmatpush3.bf16.msra.mxu0 %v4172_v8 }
  0x27   : > { %3804 = vmatprep.subr.bf16.mxu0 %v4289_v3 }
  0x28   : > { %3799 = vmatpush3.bf16.msra.mxu1 %v4174_v13 }
  0x29   : > { %3775 = vmatmul.mubr.msk.bf16.gmra.mrb[4].mxu0 %vm634_vm0, %v4475_v9  ;;  %3785 = vmatmul.mubr.msk.bf16.gmra.mrb[4].mxu1 %vm634_vm0, %v4475_v9 }
  0x2a   : > { %3792 = vmatprep.mubr.msk.bf16.mxu0 %vm4290_vm2, %v4289_v3  ;;  %3800 = vmatprep.mubr.msk.bf16.mxu1 %vm4290_vm2, %v4289_v3 }
  0x31   : > { %3793 = vmatmul.mubr.msk.bf16.vlgmr.msra.gmra.mrb[8].mxu0 %vm802_vm1, %v785_v11 }
  0x32   : > { %3808 = vmatprep.mubr.msk.bf16.mxu0 %vm4290_vm2, %v4289_v3 }
  0xf4   : > { %v3772_v14 = vpop.f32.mrb[0].mxu0  ;;  %v4510_v15 = vpop.f32.mrb[0].mxu1 }
  0xf5   : > { %v681_v16 = vpop.f32.mrb[1].mxu0  ;;  %v4512_v17 = vpop.f32.mrb[1].mxu1 }
  0xf6   : > { %v3773_v18 = vpop.f32.mrb[2].mxu0  ;;  %v4514_v19 = vpop.f32.mrb[2].mxu1 }
  0xf7   : > { %v684_v20 = vpop.f32.mrb[3].mxu0  ;;  %v4516_v21 = vpop.f32.mrb[3].mxu1 }
  0xfc   : > { %v3776_v22 = vpop.f32.mrb[4].mxu0  ;;  %v4518_v23 = vpop.f32.mrb[4].mxu1 }
  0xfd   : > { %v697_v24 = vpop.f32.mrb[5].mxu0  ;;  %v4520_v25 = vpop.f32.mrb[5].mxu1 }
  0xfe   : > { %v3777_v26 = vpop.f32.mrb[6].mxu0  ;;  %v4522_v27 = vpop.f32.mrb[6].mxu1 }
  0xff   : > { %v700_v28 = vpop.f32.mrb[7].mxu0  ;;  %v4524_v29 = vpop.f32.mrb[7].mxu1 }
 0x104   : > { %v4526_v30 = vpop.f32.mrb[8].mxu0 }
 0x105   : > { %v3794_v31 = vpop.f32.mrb[9].mxu0  ;;  %v846_v32 = vmul.f32 %v4526_v30, %v681_v16  ;;  %v847_v33 = vmul.f32 %v4526_v30, %v684_v20  ;;  %v848_v34 = vmul.f32 %v3772_v14, %v4526_v30  ;;  %v849_v35 = vmul.f32 %v3773_v18, %v4526_v30 }
 0x106   : > { %v843_v36 = vpop.f32.mrb[10].mxu0  ;;  %v850_v37 = vmul.f32 %v4526_v30, %v697_v24  ;;  %v851_v38 = vmul.f32 %v4526_v30, %v700_v28  ;;  %v852_v39 = vmul.f32 %v3776_v22, %v4526_v30  ;;  %v853_v40 = vmul.f32 %v3777_v26, %v4526_v30 }
 0x107   : > { %v3795_v41 = vpop.f32.mrb[11].mxu0  ;;  %v854_v42 = vsel %vm802_vm1, %v846_v32, 0.0  ;;  %v861_v43 = vsel %vm802_vm1, %v847_v33, 0.0  ;;  %v868_v44 = vsel %vm802_vm1, %v848_v34, 0.0  ;;  %v875_v45 = vsel %vm802_vm1, %v849_v35, 0.0 }
 0x108   : > { %v855_v46 = vrot.slane %v854_v42, 4  ;;  %v862_v47 = vrot.slane %v861_v43, 4  ;;  %v869_v48 = vrot.slane %v868_v44, 4  ;;  %v876_v49 = vrot.slane %v875_v45, 4 }
 0x109   : > { %v882_v50 = vsel %vm802_vm1, %v850_v37, 0.0  ;;  %v889_v51 = vsel %vm802_vm1, %v851_v38, 0.0  ;;  %v896_v52 = vsel %vm802_vm1, %v852_v39, 0.0  ;;  %v903_v53 = vsel %vm802_vm1, %v853_v40, 0.0 }
 0x10a   : > { %v856_v54 = vadd.f32 %v855_v46, %v854_v42  ;;  %v863_v55 = vadd.f32 %v862_v47, %v861_v43  ;;  %v870_v56 = vadd.f32 %v869_v48, %v868_v44  ;;  %v877_v57 = vadd.f32 %v876_v49, %v875_v45 }
 0x10b   : > { %v883_v58 = vrot.slane %v882_v50, 4  ;;  %v890_v59 = vrot.slane %v889_v51, 4  ;;  %v897_v60 = vrot.slane %v896_v52, 4  ;;  %v904_v61 = vrot.slane %v903_v53, 4 }
 0x10c   : > { %v857_v62 = vrot.slane %v856_v54, 2  ;;  %v864_v63 = vrot.slane %v863_v55, 2  ;;  %v871_v0 = vrot.slane %v870_v56, 2  ;;  %v878_v1 = vrot.slane %v877_v57, 2 }
 0x10d   : > { %v884_v2 = vadd.f32 %v883_v58, %v882_v50  ;;  %v891_v4 = vadd.f32 %v890_v59, %v889_v51  ;;  %v898_v8 = vadd.f32 %v897_v60, %v896_v52  ;;  %v905_v11 = vadd.f32 %v904_v61, %v903_v53 }
 0x10e   : > { %v858_v12 = vadd.f32 %v857_v62, %v856_v54  ;;  %v865_v13 = vadd.f32 %v864_v63, %v863_v55  ;;  %v872_v14 = vadd.f32 %v871_v0, %v870_v56  ;;  %v879_v16 = vadd.f32 %v878_v1, %v877_v57 }
 0x10f   : > { %v885_v18 = vrot.slane %v884_v2, 2  ;;  %v892_v20 = vrot.slane %v891_v4, 2  ;;  %v899_v22 = vrot.slane %v898_v8, 2  ;;  %v906_v24 = vrot.slane %v905_v11, 2 }
 0x110   : > { %v859_v26 = vrot.slane %v858_v12, 1  ;;  %v866_v28 = vrot.slane %v865_v13, 1  ;;  %v873_v31 = vrot.slane %v872_v14, 1  ;;  %v880_v32 = vrot.slane %v879_v16, 1 }
 0x111   : > { %v886_v33 = vadd.f32 %v885_v18, %v884_v2  ;;  %v893_v34 = vadd.f32 %v892_v20, %v891_v4  ;;  %v900_v35 = vadd.f32 %v899_v22, %v898_v8  ;;  %v907_v36 = vadd.f32 %v906_v24, %v905_v11  ;;  %v4175_v20 = vld [vmem:[%s5189_s8] sm:$0xff]   ;;  %v4178_v22 = vld [vmem:[%s5186_s5 + $0x10] sm:$0xff]   ;;  %v4180_v24 = vld [vmem:[%s5186_s5 + $0x18] sm:$0xff]  }
 0x112   : > { %v860_v37 = vadd.f32 %v859_v26, %v858_v12  ;;  %v867_v38 = vadd.f32 %v866_v28, %v865_v13  ;;  %v874_v39 = vadd.f32 %v873_v31, %v872_v14  ;;  %v881_v40 = vadd.f32 %v880_v32, %v879_v16  ;;  %3805 = vmatpush3.bf16.msra.mxu0 %v4175_v20  ;;  %v3524_v26 = vld [vmem:[%s5188_s7] ss:$0 sm:$0xff] }
 0x113   : > { %v887_v41 = vrot.slane %v886_v33, 1  ;;  %v894_v42 = vrot.slane %v893_v34, 1  ;;  %v901_v43 = vrot.slane %v900_v35, 1  ;;  %v908_v44 = vrot.slane %v907_v36, 1  ;;  %3806 = vmatprep.subr.bf16.mxu0 %v4289_v3 }
 0x114   : > { %v910_v45 = vpack.c.bf16 %v860_v37, %v860_v37  ;;  %v911_v46 = vpack.c.bf16 %v867_v38, %v867_v38  ;;  %v912_v47 = vpack.c.bf16 %v874_v39, %v874_v39  ;;  %v913_v48 = vpack.c.bf16 %v881_v40, %v881_v40 }
 0x115   : > { %v888_v49 = vadd.f32 %v887_v41, %v886_v33  ;;  %v895_v50 = vadd.f32 %v894_v42, %v893_v34  ;;  %v902_v51 = vadd.f32 %v901_v43, %v900_v35  ;;  %v909_v52 = vadd.f32 %v908_v44, %v907_v36 }
 0x116   : > { %v937_v53 = vunpack.c.l.b16 %v910_v45  ;;  %v938_v54 = vunpack.c.l.b16 %v911_v46  ;;  %v939_v55 = vunpack.c.l.b16 %v912_v47  ;;  %v4547_v60 = vmul.f32 %v4526_v30, %v4512_v17 }
 0x117   : > { %v914_v56 = vpack.c.bf16 %v888_v49, %v888_v49  ;;  %v915_v57 = vpack.c.bf16 %v895_v50, %v895_v50  ;;  %v916_v58 = vpack.c.bf16 %v902_v51, %v902_v51  ;;  %v4551_v61 = vmul.f32 %v4510_v15, %v4526_v30  ;;  %v3528_v50 = vld [vmem:[%s5190_s9] ss:$0 sm:$0xff] }
 0x118   : > { %v946_v59 = vsel %vm945_vm3, %v938_v54, %v937_v53  ;;  %v4555_v62 = vmul.f32 %v4526_v30, %v4520_v25  ;;  %v917_v63 = vpack.c.bf16 %v909_v52, %v909_v52  ;;  %v940_v0 = vunpack.c.l.b16 %v913_v48 }
 0x119   : > { %v941_v1 = vunpack.c.l.b16 %v914_v56  ;;  %v942_v2 = vunpack.c.l.b16 %v915_v57  ;;  %v948_v4 = vsel %vm947_vm4, %v939_v55, %v946_v59  ;;  %v4561_v8 = vmul.f32 %v4518_v23, %v4526_v30 }
 0x11a   : > { %v950_v17 = vsel %vm949_vm5, %v940_v0, %v948_v4  ;;  %v4565_v15 = vmul.f32 %v4526_v30, %v4516_v21  ;;  %v4569_v25 = vmul.f32 %v4514_v19, %v4526_v30  ;;  %v943_v11 = vunpack.c.l.b16 %v916_v58 }
 0x11b   : > { %v952_v12 = vsel %vm951_vm6, %v941_v1, %v950_v17  ;;  %v944_v13 = vunpack.c.l.b16 %v917_v63  ;;  %v4576_v23 = vmul.f32 %v4526_v30, %v4524_v29  ;;  %v4580_v21 = vmul.f32 %v4522_v27, %v4526_v30  ;;  %v4176_v27 = vld [vmem:[%s5189_s8 + $0x8] sm:$0xff]   ;;  %v4181_v17 = vld [vmem:[%s5187_s6 + $0x10] sm:$0xff]  }
 0x11c   : > { %v954_v14 = vsel %vm953_vm7, %v942_v2, %v952_v12  ;;  %3807 = vmatpush3.bf16.msra.mxu0 %v4176_v27  ;;  %v4177_v29 = vld [vmem:[%s5184_s3 + $0x8] sm:$0xff]  }
 0x11d   : > { %v956_v16 = vsel %vm955_vm8, %v943_v11, %v954_v14  ;;  %v4179_v30 = vld [vmem:[%s5185_s4 + $0x8] sm:$0xff]   ;;  %3812 = vmatprep.subr.bf16.mxu1 %v4177_v29  ;;  %v4182_v11 = vld [vmem:[%s5187_s6 + $0x18] sm:$0xff]  }
 0x11e   : > { %v958_v19 = vsel %vm957_vm9, %v944_v13, %v956_v16  ;;  %3822 = vmatprep.subr.bf16.mxu0 %v4179_v30 }
 0x11f   : > { %v959_v18 = vpack.c.b16 %v958_v19, %v958_v19 }
 0x121   : > { %3801 = vmatmul.mubr.msk.bf16.vlgmr.msra.gmra.mrb[8].mxu1 %vm802_vm1, %v959_v18 }
 0x122   : > { %3814 = vmatprep.mubr.msk.bf16.mxu1 %vm634_vm0, %v4449_v5  ;;  %3813 = vmatpush3.bf16.msra.mxu1 %v4177_v29 }
 0x123   : > { %3832 = vmatprep.subr.bf16.mxu1 %v4289_v3 }
 0x129   : > { %3815 = vmatmul.mubr.msk.bf16.vlgmr.msra.gmra.mrb[12].mxu1 %vm634_vm0, %v4452_v6 }
 0x12a   : > { %3833 = vmatpush3.bf16.msra.mxu1 %v4178_v22  ;;  %3818 = vmatprep.mubr.msk.bf16.mxu1 %vm634_vm0, %v4460_v7 }
 0x12b   : > { %3834 = vmatprep.subr.bf16.mxu1 %v4289_v3 }
 0x12e   : > { %3835 = vmatpush3.bf16.msra.mxu1 %v4180_v24 }
 0x12f   : > { %3848 = vmatprep.subr.bf16.mxu1 %v4289_v3 }
 0x131   : > { %3819 = vmatmul.mubr.msk.bf16.gmra.mrb[16].mxu1 %vm634_vm0, %v4475_v9 }
 0x132   : > { %3836 = vmatprep.mubr.msk.bf16.mxu1 %vm4290_vm2, %v4289_v3 }
 0x1f4   : > { %v1009_v28 = vpop.f32.mrb[8].mxu1 }
 0x1f5   : > { %v1010_v31 = vadd.f32 %v3524_v26, %v1009_v28  ;;  %v3802_v32 = vpop.f32.mrb[9].mxu1 }
 0x1f6   : > { %v1012_v33 = vpop.f32.mrb[10].mxu1 }
 0x1f7   : > { %v1015_v34 = vsub.f32 0.0, %v1010_v31  ;;  %v3803_v35 = vpop.f32.mrb[11].mxu1 }
 0x1f9   : > { %v1016_v36 = vmul.f32 1.442695, %v1015_v34 }
 0x1fb   : > { %4205 = vpow2.f32 %v1016_v36 }
 0x1fc   : > { %v3816_v42 = vpop.f32.mrb[12].mxu1 }
 0x1fd   : > { %v1148_v43 = vpop.f32.mrb[13].mxu1 }
 0x1fe   : > { %v3817_v44 = vpop.f32.mrb[14].mxu1 }
 0x1ff   : > { %v1151_v45 = vpop.f32.mrb[15].mxu1 }
 0x204   : > { %v3820_v46 = vpop.f32.mrb[16].mxu1 }
 0x205   : > { %v4206_v37 = vpop.eup %4205  ;;  %v1164_v47 = vpop.f32.mrb[17].mxu1 }
 0x206   : > { %v1018_v38 = vadd.f32 1.0, %v4206_v37  ;;  %v3821_v48 = vpop.f32.mrb[18].mxu1 }
 0x207   : > { %v1167_v49 = vpop.f32.mrb[19].mxu1 }
 0x208   : > { %4207 = vrcp.f32 %v1018_v38 }
 0x212   : > { %v4208_v39 = vpop.eup %4207 }
 0x213   : > { %v1020_v40 = vmul.f32 %v4208_v39, %v1010_v31 }
 0x215   : > { %v1021_v41 = vpack.c.bf16 %v1020_v40, %v1020_v40 }
 0x217   : > { %3809 = vmatmul.mubr.msk.bf16.vlgmr.msra.gmra.mrb[12].mxu0 %vm802_vm1, %v1021_v41 }
 0x218   : > { %3823 = vmatpush3.bf16.msra.mxu0 %v4179_v30  ;;  %3824 = vmatprep.mubr.msk.bf16.mxu0 %vm634_vm0, %v4449_v5 }
 0x219   : > { %3840 = vmatprep.subr.bf16.mxu0 %v4289_v3 }
 0x21f   : > { %3825 = vmatmul.mubr.msk.bf16.vlgmr.msra.gmra.mrb[16].mxu0 %vm634_vm0, %v4452_v6 }
 0x220   : > { %3828 = vmatprep.mubr.msk.bf16.mxu0 %vm634_vm0, %v4460_v7  ;;  %3841 = vmatpush3.bf16.msra.mxu0 %v4181_v17 }
 0x221   : > { %3842 = vmatprep.subr.bf16.mxu0 %v4289_v3 }
 0x224   : > { %3843 = vmatpush3.bf16.msra.mxu0 %v4182_v11 }
 0x225   : > { %3856 = vmatprep.subr.bf16.mxu0 %v4289_v3 }
 0x227   : > { %3829 = vmatmul.mubr.msk.bf16.gmra.mrb[20].mxu0 %vm634_vm0, %v4475_v9 }
 0x228   : > { %3844 = vmatprep.mubr.msk.bf16.mxu0 %vm4290_vm2, %v4289_v3 }
 0x2ea   : > { %v1082_v51 = vpop.f32.mrb[12].mxu0 }
 0x2eb   : > { %v1083_v52 = vadd.f32 %v3528_v50, %v1082_v51  ;;  %v3810_v53 = vpop.f32.mrb[13].mxu0 }
 0x2ec   : > { %v1085_v54 = vpop.f32.mrb[14].mxu0 }
 0x2ed   : > { %v4635_v55 = vadd.f32 %v1083_v52, %v4488_v10  ;;  %v3811_v56 = vpop.f32.mrb[15].mxu0 }
 0x2ef   : > { %v1253_v57 = vpack.c.bf16 %v4635_v55, %v4635_v55 }
 0x2f1   : > { %3837 = vmatmul.mubr.msk.bf16.vlgmr.msra.gmra.mrb[20].mxu1 %vm802_vm1, %v1253_v57 }
 0x2f2   : > { %v4640_v58 = vpop.f32.mrb[16].mxu0  ;;  %3852 = vmatprep.mubr.msk.bf16.mxu1 %vm4290_vm2, %v4289_v3 }
 0x2f3   : > { %v4644_v59 = vpop.f32.mrb[17].mxu0 }
 0x2f4   : > { %v4646_v63 = vpop.f32.mrb[18].mxu0 }
 0x2f5   : > { %v4648_v0 = vpop.f32.mrb[19].mxu0 }
 0x2fa   : > { %v4650_v1 = vpop.f32.mrb[20].mxu0 }
 0x2fb   : > { %v4652_v10 = vpop.f32.mrb[21].mxu0 }
 0x2fc   : > { %v4654_v2 = vpop.f32.mrb[22].mxu0 }
 0x2fd   : > { %v4656_v4 = vpop.f32.mrb[23].mxu0 }
 0x3c4   : > { %v4666_v12 = vpop.f32.mrb[20].mxu1 }
 0x3c5   : > { %v3838_v13 = vpop.f32.mrb[21].mxu1  ;;  %v1314_v14 = vmul.f32 %v4666_v12, %v1148_v43  ;;  %v1315_v16 = vmul.f32 %v4666_v12, %v1151_v45  ;;  %v1316_v19 = vmul.f32 %v3816_v42, %v4666_v12  ;;  %v1317_v18 = vmul.f32 %v3817_v44, %v4666_v12 }
 0x3c6   : > { %v1311_v20 = vpop.f32.mrb[22].mxu1  ;;  %v1318_v27 = vmul.f32 %v4666_v12, %v1164_v47  ;;  %v1319_v29 = vmul.f32 %v4666_v12, %v1167_v49  ;;  %v1320_v30 = vmul.f32 %v3820_v46, %v4666_v12  ;;  %v1321_v22 = vmul.f32 %v3821_v48, %v4666_v12 }
 0x3c7   : > { %v3839_v24 = vpop.f32.mrb[23].mxu1  ;;  %v1322_v26 = vsel %vm802_vm1, %v1314_v14, 0.0  ;;  %v1329_v28 = vsel %vm802_vm1, %v1315_v16, 0.0  ;;  %v1336_v31 = vsel %vm802_vm1, %v1316_v19, 0.0  ;;  %v1343_v32 = vsel %vm802_vm1, %v1317_v18, 0.0 }
 0x3c8   : > { %v1323_v33 = vrot.slane %v1322_v26, 4  ;;  %v1330_v34 = vrot.slane %v1329_v28, 4  ;;  %v1337_v35 = vrot.slane %v1336_v31, 4  ;;  %v1344_v36 = vrot.slane %v1343_v32, 4 }
 0x3c9   : > { %v1350_v37 = vsel %vm802_vm1, %v1318_v27, 0.0  ;;  %v1357_v38 = vsel %vm802_vm1, %v1319_v29, 0.0  ;;  %v1364_v39 = vsel %vm802_vm1, %v1320_v30, 0.0  ;;  %v1371_v40 = vsel %vm802_vm1, %v1321_v22, 0.0 }
 0x3ca   : > { %v1324_v41 = vadd.f32 %v1323_v33, %v1322_v26  ;;  %v1331_v42 = vadd.f32 %v1330_v34, %v1329_v28  ;;  %v1338_v43 = vadd.f32 %v1337_v35, %v1336_v31  ;;  %v1345_v44 = vadd.f32 %v1344_v36, %v1343_v32 }
 0x3cb   : > { %v1351_v45 = vrot.slane %v1350_v37, 4  ;;  %v1358_v46 = vrot.slane %v1357_v38, 4  ;;  %v1365_v47 = vrot.slane %v1364_v39, 4  ;;  %v1372_v48 = vrot.slane %v1371_v40, 4 }
 0x3cc   : > { %v1325_v49 = vrot.slane %v1324_v41, 2  ;;  %v1332_v50 = vrot.slane %v1331_v42, 2  ;;  %v1339_v51 = vrot.slane %v1338_v43, 2  ;;  %v1346_v52 = vrot.slane %v1345_v44, 2 }
 0x3cd   : > { %v1352_v53 = vadd.f32 %v1351_v45, %v1350_v37  ;;  %v1359_v54 = vadd.f32 %v1358_v46, %v1357_v38  ;;  %v1366_v56 = vadd.f32 %v1365_v47, %v1364_v39  ;;  %v1373_v57 = vadd.f32 %v1372_v48, %v1371_v40 }
 0x3ce   : > { %v1326_v17 = vadd.f32 %v1325_v49, %v1324_v41  ;;  %v1333_v11 = vadd.f32 %v1332_v50, %v1331_v42  ;;  %v1340_v13 = vadd.f32 %v1339_v51, %v1338_v43  ;;  %v1347_v14 = vadd.f32 %v1346_v52, %v1345_v44 }
 0x3cf   : > { %v1353_v16 = vrot.slane %v1352_v53, 2  ;;  %v1360_v19 = vrot.slane %v1359_v54, 2  ;;  %v1367_v18 = vrot.slane %v1366_v56, 2  ;;  %v1374_v20 = vrot.slane %v1373_v57, 2 }
 0x3d0   : > { %v1327_v27 = vrot.slane %v1326_v17, 1  ;;  %v1334_v29 = vrot.slane %v1333_v11, 1  ;;  %v1341_v30 = vrot.slane %v1340_v13, 1  ;;  %v1348_v22 = vrot.slane %v1347_v14, 1 }
 0x3d1   : > { %v1354_v24 = vadd.f32 %v1353_v16, %v1352_v53  ;;  %v1361_v26 = vadd.f32 %v1360_v19, %v1359_v54  ;;  %v1368_v28 = vadd.f32 %v1367_v18, %v1366_v56  ;;  %v1375_v31 = vadd.f32 %v1374_v20, %v1373_v57 }
 0x3d2   : > { %v1328_v32 = vadd.f32 %v1327_v27, %v1326_v17  ;;  %v1335_v33 = vadd.f32 %v1334_v29, %v1333_v11  ;;  %v1342_v34 = vadd.f32 %v1341_v30, %v1340_v13  ;;  %v1349_v35 = vadd.f32 %v1348_v22, %v1347_v14 }
 0x3d3   : > { %v1355_v36 = vrot.slane %v1354_v24, 1  ;;  %v1362_v37 = vrot.slane %v1361_v26, 1  ;;  %v1369_v38 = vrot.slane %v1368_v28, 1  ;;  %v1376_v39 = vrot.slane %v1375_v31, 1 }
 0x3d4   : > { %v1378_v40 = vpack.c.bf16 %v1328_v32, %v1328_v32  ;;  %v1379_v41 = vpack.c.bf16 %v1335_v33, %v1335_v33  ;;  %v1380_v42 = vpack.c.bf16 %v1342_v34, %v1342_v34  ;;  %v1381_v43 = vpack.c.bf16 %v1349_v35, %v1349_v35  ;;  %v4739_v34 = vld [vmem:[%s4485_s23 + $0x20] sm:$0xff]  }
 0x3d5   : > { %v1356_v44 = vadd.f32 %v1355_v36, %v1354_v24  ;;  %v1363_v45 = vadd.f32 %v1362_v37, %v1361_v26  ;;  %v1370_v46 = vadd.f32 %v1369_v38, %v1368_v28  ;;  %v1377_v47 = vadd.f32 %v1376_v39, %v1375_v31  ;;  %v4730_v31 = vld [vmem:[%s4485_s23 + $0x10] sm:$0xff]  }
 0x3d6   : > { %v1407_v48 = vunpack.c.l.b16 %v1378_v40  ;;  %v1408_v49 = vunpack.c.l.b16 %v1379_v41  ;;  %v1409_v50 = vunpack.c.l.b16 %v1380_v42  ;;  %v1554_v56 = vmul.f32 %v4666_v12, %v4644_v59  ;;  %v4748_v37 = vld [vmem:[%s4485_s23 + $0x30] sm:$0xff]  }
 0x3d7   : > { %v1382_v51 = vpack.c.bf16 %v1356_v44, %v1356_v44  ;;  %v1383_v52 = vpack.c.bf16 %v1363_v45, %v1363_v45  ;;  %v1384_v53 = vpack.c.bf16 %v1370_v46, %v1370_v46  ;;  %v1556_v57 = vmul.f32 %v4640_v58, %v4666_v12  ;;  %v4193_v44 = vld [vmem:[%s5184_s3 + $0x10] sm:$0xff]   ;;  %v4196_v45 = vld [vmem:[%s5186_s5 + $0x28] sm:$0xff]  }
 0x3d8   : > { %v1415_v54 = vsel %vm945_vm3, %v1408_v49, %v1407_v48  ;;  %v1558_v17 = vmul.f32 %v4666_v12, %v4652_v10  ;;  %v1385_v11 = vpack.c.bf16 %v1377_v47, %v1377_v47  ;;  %v1410_v13 = vunpack.c.l.b16 %v1381_v43 }
 0x3d9   : > { %v1411_v14 = vunpack.c.l.b16 %v1382_v51  ;;  %v1412_v16 = vunpack.c.l.b16 %v1383_v52  ;;  %v1416_v19 = vsel %vm947_vm4, %v1409_v50, %v1415_v54  ;;  %v1560_v20 = vmul.f32 %v4650_v1, %v4666_v12 }
 0x3da   : > { %v1417_v18 = vsel %vm949_vm5, %v1410_v13, %v1416_v19  ;;  %v4697_v59 = vmul.f32 %v4666_v12, %v4648_v0  ;;  %v4701_v58 = vmul.f32 %v4646_v63, %v4666_v12  ;;  %v1413_v10 = vunpack.c.l.b16 %v1384_v53 }
 0x3db   : > { %v1418_v27 = vsel %vm951_vm6, %v1411_v14, %v1417_v18  ;;  %v1414_v29 = vunpack.c.l.b16 %v1385_v11  ;;  %v1562_v24 = vpack.c.bf16 %v1554_v56, %v1554_v56  ;;  %v4708_v1 = vmul.f32 %v4666_v12, %v4656_v4  ;;  %v4721_v4 = vld [vmem:[%s4485_s23] sm:$0xff]   ;;  %v4824_v11 = vld [vmem:[%s4485_s23 + $0x8] sm:$0xff]  }
 0x3dc   : > { %v1419_v30 = vsel %vm953_vm7, %v1412_v16, %v1418_v27  ;;  %v4712_v0 = vmul.f32 %v4654_v2, %v4666_v12  ;;  %v1564_v2 = vpack.c.bf16 %v1556_v57, %v1556_v57  ;;  %v1566_v32 = vpack.c.bf16 %v1558_v17, %v1558_v17  ;;  %v4835_v16 = vld [vmem:[%s4485_s23 + $0x18] sm:$0xff]  }
 0x3dd   : > { %v1420_v22 = vsel %vm955_vm8, %v1413_v10, %v1419_v30  ;;  %v1581_v28 = vsel %vm1579_vm10, %v1562_v24, 0  ;;  %v1568_v35 = vpack.c.bf16 %v1560_v20, %v1560_v20  ;;  %v1097_v38 = vpack.c.bf16 %v4547_v60, %v4547_v60  ;;  %v4846_v20 = vld [vmem:[%s4485_s23 + $0x28] sm:$0xff]   ;;  %v4857_v10 = vld [vmem:[%s4485_s23 + $0x38] sm:$0xff]  }
 0x3de   : > { %v1421_v63 = vsel %vm957_vm9, %v1414_v29, %v1420_v22  ;;  %v1685_v12 = vsel %vm1579_vm10, %v1564_v2, 0  ;;  %v1789_v33 = vsel %vm1579_vm10, %v1566_v32, 0  ;;  %v1099_v40 = vpack.c.bf16 %v4551_v61, %v4551_v61 }
 0x3df   : > { %v1422_v26 = vpack.c.b16 %v1421_v63, %v1421_v63  ;;  %v1893_v36 = vsel %vm1579_vm10, %v1568_v35, 0  ;;  %v1989_v39 = vsel %vm1579_vm10, %v1097_v38, 0  ;;  %v1101_v60 = vpack.c.bf16 %v4555_v62, %v4555_v62  ;;  %v4187_v62 = vld [vmem:[%s5189_s8 + $0x10] sm:$0xff]  }
 0x3e0   : > { %v2077_v41 = vsel %vm1579_vm10, %v1099_v40, 0  ;;  %v1103_v61 = vpack.c.bf16 %v4561_v8, %v4561_v8  ;;  %3849 = vmatpush3.bf16.msra.mxu1 %v4187_v62  ;;  %v4188_v8 = vld [vmem:[%s5189_s8 + $0x18] sm:$0xff]   ;;  %v1563_v56 = vpack.c.bf16 %v4697_v59, %v4697_v59  ;;  %v1565_v13 = vpack.c.bf16 %v4701_v58, %v4701_v58  ;;  %v4223_v63 = vld [vmem:[%s4446_s25 + $0x10] sm:$0xff]  }
 0x3e1   : > { %3845 = vmatmul.mubr.msk.bf16.vlgmr.msra.gmra.mrb[24].mxu0 %vm802_vm1, %v1422_v26  ;;  %v2165_v42 = vsel %vm1579_vm10, %v1101_v60, 0  ;;  %3850 = vmatprep.subr.bf16.mxu1 %v4289_v3  ;;  %v1567_v19 = vpack.c.bf16 %v4708_v1, %v4708_v1  ;;  %v1569_v59 = vpack.c.bf16 %v4712_v0, %v4712_v0  ;;  %v1098_v27 = vpack.c.bf16 %v4565_v15, %v4565_v15  ;;  %v4222_v0 = vld [vmem:[%s4446_s25 + $0x8] sm:$0xff]   ;;  %v4224_v26 = vld [vmem:[%s4446_s25 + $0x18] sm:$0xff]  }
 0x3e2   : > { %3857 = vmatpush3.bf16.msra.mxu0 %v1581_v28  ;;  %3858 = vmatprep.mubr.msk.bf16.mxu0 %vm4290_vm2, %v4289_v3  ;;  %v2253_v43 = vsel %vm1579_vm10, %v1103_v61, 0  ;;  %v1633_v17 = vsel %vm1579_vm10, %v1563_v56, 0  ;;  %v1737_v14 = vsel %vm1579_vm10, %v1565_v13, 0  ;;  %v1100_v30 = vpack.c.bf16 %v4569_v25, %v4569_v25 }
 0x3e3   : > { %3868 = vmatprep.subr.bf16.mxu0 %v4289_v3  ;;  %v1841_v18 = vsel %vm1579_vm10, %v1567_v19, 0  ;;  %v1945_v58 = vsel %vm1579_vm10, %v1569_v59, 0  ;;  %v2033_v29 = vsel %vm1579_vm10, %v1098_v27, 0  ;;  %v1102_v15 = vpack.c.bf16 %v4576_v23, %v4576_v23  ;;  %v4195_v23 = vld [vmem:[%s5185_s4 + $0x10] sm:$0xff]  }
 0x3e4   : > { %3851 = vmatpush3.bf16.msra.mxu1 %v4188_v8  ;;  %v2121_v22 = vsel %vm1579_vm10, %v1100_v30, 0  ;;  %v1104_v24 = vpack.c.bf16 %v4580_v21, %v4580_v21  ;;  %v4221_v21 = vld [vmem:[%s4446_s25] sm:$0xff]   ;;  %s3656_s25 = sshll.u32 %s4433_s21, 7 }
 0x3e5   : > { %3862 = vmatprep.subr.bf16.mxu1 %v4289_v3  ;;  %v2209_v25 = vsel %vm1579_vm10, %v1102_v15, 0  ;;  %s5036_s28 = scalar_lea.vmem %s5197_s16, %s3656_s25  ;;  %s3365_s25 = sshll.u32 %s550_s30, 4  ;;  %s3366_s25 = int_to_ptr.vmem [resolvable:$true] %s3365_s25 }
 0x3e6   : > { %v2297_v1 = vsel %vm1579_vm10, %v1104_v24, 0  ;;  %s4225_s1 = scalar_lea.vmem %s3366_s25, 128  ;;  %p4232_p0 = scmp.lt.s32.totalorder %s3366_s25, %s4230_s0 }
 0x3e7   : > { %p4226_p11 = scmp.ne.s32.totalorder %s3366_s25, %s4225_s1  ;;  %p4233_p1 = scmp.lt.s32.totalorder %s4231_s2, %s4225_s1 }
 0x3e9   : > { %3859 = vmatmul.mubr.msk.bf16.vlgmr.msra.gmra.mrb[28].mxu0 %vm1575_vm11, %v4721_v4  ;;  %p4227_p12 = pnand %p4226_p11, %p4418_p5  ;;  %p4234_p2 = por %p4233_p1, %p4232_p0 }
 0x3ea   : > { %3869 = vmatpush3.bf16.msra.mxu0 %v1685_v12  ;;  %3870 = vmatprep.mubr.msk.bf16.mxu0 %vm4290_vm2, %v4289_v3 }
 0x3eb   : > { %3880 = vmatprep.subr.bf16.mxu0 %v4289_v3  ;;  %p4228_p13 = pneg %p4227_p12 }
 0x3ed   : > { %p4235_p3 = pnand %p4234_p2, %p4228_p13 }
 0x3f1   : > { %3871 = vmatmul.mubr.msk.bf16.vlgmr.msra.gmra.mrb[32].mxu0 %vm1575_vm11, %v4730_v31 }
 0x3f2   : > { %3881 = vmatpush3.bf16.msra.mxu0 %v1789_v33  ;;  %3882 = vmatprep.mubr.msk.bf16.mxu0 %vm4290_vm2, %v4289_v3 }
 0x3f3   : > { %3892 = vmatprep.subr.bf16.mxu0 %v4289_v3 }
 0x3f9   : > { %3883 = vmatmul.mubr.msk.bf16.vlgmr.msra.gmra.mrb[36].mxu0 %vm1575_vm11, %v4739_v34 }
 0x3fa   : > { %3893 = vmatpush3.bf16.msra.mxu0 %v1893_v36  ;;  %3894 = vmatprep.mubr.msk.bf16.mxu0 %vm4290_vm2, %v4289_v3 }
 0x3fb   : > { %3904 = vmatprep.subr.bf16.mxu0 %v4289_v3 }
 0x401   : > { %3895 = vmatmul.mubr.msk.bf16.vlgmr.msra.gmra.mrb[40].mxu0 %vm1575_vm11, %v4748_v37 }
 0x402   : > { %3905 = vmatpush3.bf16.msra.mxu0 %v1989_v39  ;;  %3906 = vmatprep.mubr.msk.bf16.mxu0 %vm4290_vm2, %v4289_v3  ;;  %v3567_v39 = vld [vmem:[%s5190_s9 + $0x1] ss:$0 sm:$0xff] }
 0x403   : > { %3916 = vmatprep.subr.bf16.mxu0 %v4289_v3 }
 0x409   : > { %3907 = vmatmul.mubr.msk.bf16.vlgmr.msra.gmra.mrb[28].mxu0 %vm1575_vm11, %v4721_v4 }
 0x40a   : > { %3917 = vmatpush3.bf16.msra.mxu0 %v2077_v41  ;;  %3918 = vmatprep.mubr.msk.bf16.mxu0 %vm4290_vm2, %v4289_v3 }
 0x40b   : > { %3928 = vmatprep.subr.bf16.mxu0 %v4289_v3 }
 0x411   : > { %3919 = vmatmul.mubr.msk.bf16.vlgmr.msra.gmra.mrb[32].mxu0 %vm1575_vm11, %v4730_v31 }
 0x412   : > { %3929 = vmatpush3.bf16.msra.mxu0 %v2165_v42  ;;  %3930 = vmatprep.mubr.msk.bf16.mxu0 %vm4290_vm2, %v4289_v3 }
 0x413   : > { %3940 = vmatprep.subr.bf16.mxu0 %v4289_v3 }
 0x419   : > { %3931 = vmatmul.mubr.msk.bf16.vlgmr.msra.gmra.mrb[36].mxu0 %vm1575_vm11, %v4739_v34 }
 0x41a   : > { %3941 = vmatpush3.bf16.msra.mxu0 %v2253_v43  ;;  %3942 = vmatprep.mubr.msk.bf16.mxu0 %vm4290_vm2, %v4289_v3 }
 0x41b   : > { %3952 = vmatprep.subr.bf16.mxu0 %v4193_v44 }
 0x421   : > { %3943 = vmatmul.mubr.msk.bf16.vlgmr.msra.gmra.mrb[40].mxu0 %vm1575_vm11, %v4748_v37 }
 0x422   : > { %3954 = vmatprep.mubr.msk.bf16.mxu0 %vm634_vm0, %v4449_v5  ;;  %3953 = vmatpush3.bf16.msra.mxu0 %v4193_v44  ;;  %v4194_v5 = vld [vmem:[%s5186_s5 + $0x20] sm:$0xff]  }
 0x423   : > { %3972 = vmatprep.subr.bf16.mxu0 %v4289_v3 }
 0x429   : > { %3955 = vmatmul.mubr.msk.bf16.vlgmr.msra.gmra.mrb[44].mxu0 %vm634_vm0, %v4452_v6  ;;  %v3558_v6 = vld [vmem:[%s5188_s7 + $0x1] ss:$0 sm:$0xff] }
 0x42a   : > { %3958 = vmatprep.mubr.msk.bf16.mxu0 %vm634_vm0, %v4460_v7  ;;  %3973 = vmatpush3.bf16.msra.mxu0 %v4194_v5 }
 0x42b   : > { %3974 = vmatprep.subr.bf16.mxu0 %v4289_v3 }
 0x42e   : > { %3975 = vmatpush3.bf16.msra.mxu0 %v4196_v45 }
 0x42f   : > { %3988 = vmatprep.subr.bf16.mxu0 %v4289_v3 }
 0x431   : > { %3959 = vmatmul.mubr.msk.bf16.gmra.mrb[48].mxu0 %vm634_vm0, %v4475_v9 }
 0x432   : > { %3976 = vmatprep.mubr.msk.bf16.mxu0 %vm4290_vm2, %v4289_v3 }
 0x4b4   : > { %v1472_v7 = vpop.f32.mrb[24].mxu0 }
 0x4b5   : > { %v1473_v46 = vadd.f32 %v3558_v6, %v1472_v7  ;;  %v3846_v47 = vpop.f32.mrb[25].mxu0 }
 0x4b6   : > { %v1475_v48 = vpop.f32.mrb[26].mxu0  ;;  %v4197_v47 = vld [vmem:[%s5187_s6 + $0x20] sm:$0xff]  }
 0x4b7   : > { %v1478_v49 = vsub.f32 0.0, %v1473_v46  ;;  %v3847_v9 = vpop.f32.mrb[27].mxu0  ;;  %v4198_v48 = vld [vmem:[%s5187_s6 + $0x28] sm:$0xff]  }
 0x4b9   : > { %v1479_v50 = vmul.f32 1.442695, %v1478_v49 }
 0x4bb   : > { %4209 = vpow2.f32 %v1479_v50 }
 0x4c5   : > { %v4210_v51 = vpop.eup %4209 }
 0x4c6   : > { %v1481_v52 = vadd.f32 1.0, %v4210_v51 }
 0x4c8   : > { %4211 = vrcp.f32 %v1481_v52 }
 0x4d2   : > { %v4212_v53 = vpop.eup %4211 }
 0x4d3   : > { %v1483_v54 = vmul.f32 %v4212_v53, %v1473_v46 }
 0x4d5   : > { %v1484_v57 = vpack.c.bf16 %v1483_v54, %v1483_v54 }
 0x4d7   : > { %3853 = vmatmul.mubr.msk.bf16.vlgmr.msra.gmra.mrb[24].mxu1 %vm802_vm1, %v1484_v57 }
 0x4d8   : > { %3863 = vmatpush3.bf16.msra.mxu1 %v1633_v17  ;;  %3864 = vmatprep.mubr.msk.bf16.mxu1 %vm4290_vm2, %v4289_v3 }
 0x4d9   : > { %3874 = vmatprep.subr.bf16.mxu1 %v4289_v3 }
 0x4df   : > { %3865 = vmatmul.mubr.msk.bf16.vlgmr.msra.gmra.mrb[28].mxu1 %vm1575_vm11, %v4824_v11 }
 0x4e0   : > { %3875 = vmatpush3.bf16.msra.mxu1 %v1737_v14  ;;  %3876 = vmatprep.mubr.msk.bf16.mxu1 %vm4290_vm2, %v4289_v3 }
 0x4e1   : > { %3886 = vmatprep.subr.bf16.mxu1 %v4289_v3 }
 0x4e7   : > { %3877 = vmatmul.mubr.msk.bf16.vlgmr.msra.gmra.mrb[32].mxu1 %vm1575_vm11, %v4835_v16 }
 0x4e8   : > { %3887 = vmatpush3.bf16.msra.mxu1 %v1841_v18  ;;  %3888 = vmatprep.mubr.msk.bf16.mxu1 %vm4290_vm2, %v4289_v3 }
 0x4e9   : > { %3898 = vmatprep.subr.bf16.mxu1 %v4289_v3 }
 0x4ef   : > { %3889 = vmatmul.mubr.msk.bf16.vlgmr.msra.gmra.mrb[36].mxu1 %vm1575_vm11, %v4846_v20 }
 0x4f0   : > { %3899 = vmatpush3.bf16.msra.mxu1 %v1945_v58  ;;  %3900 = vmatprep.mubr.msk.bf16.mxu1 %vm4290_vm2, %v4289_v3 }
 0x4f1   : > { %3910 = vmatprep.subr.bf16.mxu1 %v4289_v3 }
 0x4f7   : > { %3901 = vmatmul.mubr.msk.bf16.vlgmr.msra.gmra.mrb[40].mxu1 %vm1575_vm11, %v4857_v10 }
 0x4f8   : > { %3911 = vmatpush3.bf16.msra.mxu1 %v2033_v29  ;;  %3912 = vmatprep.mubr.msk.bf16.mxu1 %vm4290_vm2, %v4289_v3 }
 0x4f9   : > { %3922 = vmatprep.subr.bf16.mxu1 %v4289_v3 }
 0x4fc   : > { %v3956_v28 = vpop.f32.mrb[44].mxu0 }
 0x4fd   : > { %v2383_v2 = vpop.f32.mrb[45].mxu0 }
 0x4fe   : > { %v3957_v12 = vpop.f32.mrb[46].mxu0 }
 0x4ff   : > { %3913 = vmatmul.mubr.msk.bf16.vlgmr.msra.gmra.mrb[28].mxu1 %vm1575_vm11, %v4824_v11  ;;  %v2386_v32 = vpop.f32.mrb[47].mxu0 }
 0x500   : > { %3923 = vmatpush3.bf16.msra.mxu1 %v2121_v22  ;;  %3924 = vmatprep.mubr.msk.bf16.mxu1 %vm4290_vm2, %v4289_v3 }
 0x501   : > { %3934 = vmatprep.subr.bf16.mxu1 %v4289_v3 }
 0x504   : > { %v3960_v33 = vpop.f32.mrb[48].mxu0 }
 0x505   : > { %v2399_v35 = vpop.f32.mrb[49].mxu0 }
 0x506   : > { %v3961_v36 = vpop.f32.mrb[50].mxu0 }
 0x507   : > { %3925 = vmatmul.mubr.msk.bf16.vlgmr.msra.gmra.mrb[32].mxu1 %vm1575_vm11, %v4835_v16  ;;  %v2402_v38 = vpop.f32.mrb[51].mxu0 }
 0x508   : > { %3935 = vmatpush3.bf16.msra.mxu1 %v2209_v25  ;;  %3936 = vmatprep.mubr.msk.bf16.mxu1 %vm4290_vm2, %v4289_v3 }
 0x509   : > { %3946 = vmatprep.subr.bf16.mxu1 %v4289_v3 }
 0x50f   : > { %3937 = vmatmul.mubr.msk.bf16.vlgmr.msra.gmra.mrb[36].mxu1 %vm1575_vm11, %v4846_v20 }
 0x510   : > { %3947 = vmatpush3.bf16.msra.mxu1 %v2297_v1  ;;  %3948 = vmatprep.mubr.msk.bf16.mxu1 %vm4290_vm2, %v4289_v3 }
 0x511   : > { %3962 = vmatprep.subr.bf16.mxu1 %v4195_v23 }
 0x517   : > { %3949 = vmatmul.mubr.msk.bf16.vlgmr.msra.gmra.mrb[40].mxu1 %vm1575_vm11, %v4857_v10 }
 0x518   : > { %3963 = vmatpush3.bf16.msra.mxu1 %v4195_v23  ;;  %3964 = vmatprep.mubr.msk.bf16.mxu1 %vm634_vm0, %v4221_v21 }
 0x519   : > { %3980 = vmatprep.subr.bf16.mxu1 %v4289_v3 }
 0x51f   : > { %3965 = vmatmul.mubr.msk.bf16.vlgmr.msra.gmra.mrb[44].mxu1 %vm634_vm0, %v4222_v0 }
 0x520   : > { %3968 = vmatprep.mubr.msk.bf16.mxu1 %vm634_vm0, %v4223_v63  ;;  %3981 = vmatpush3.bf16.msra.mxu1 %v4197_v47 }
 0x521   : > { %3982 = vmatprep.subr.bf16.mxu1 %v4289_v3 }
 0x524   : > { %3983 = vmatpush3.bf16.msra.mxu1 %v4198_v48 }
 0x525   : > { %4002 = vmatprep.subr.bf16.mxu1 %v4289_v3 }
 0x527   : > { %3969 = vmatmul.mubr.msk.bf16.gmra.mrb[48].mxu1 %vm634_vm0, %v4224_v26 }
 0x528   : > { %3984 = vmatprep.mubr.msk.bf16.mxu1 %vm4290_vm2, %v4289_v3 }
 0x5aa   : > { %v1547_v40 = vpop.f32.mrb[24].mxu1 }
 0x5ab   : > { %v1548_v41 = vadd.f32 %v3567_v39, %v1547_v40  ;;  %v3854_v60 = vpop.f32.mrb[25].mxu1 }
 0x5ac   : > { %v1550_v42 = vpop.f32.mrb[26].mxu1 }
 0x5ad   : > { %v4910_v61 = vadd.f32 %v1548_v41, %v4635_v55  ;;  %v3855_v43 = vpop.f32.mrb[27].mxu1 }
 0x5af   : > { %v2488_v62 = vpack.c.bf16 %v4910_v61, %v4910_v61 }
 0x5b1   : > { %3977 = vmatmul.mubr.msk.bf16.vlgmr.msra.gmra.mrb[52].mxu0 %vm802_vm1, %v2488_v62 }
 0x5b2   : > { %3992 = vmatprep.mubr.msk.bf16.mxu0 %vm4290_vm2, %v4289_v3 }
 0x5f2   : > { %v4917_v8 = vpop.f32.mrb[44].mxu1 }
 0x5f3   : > { %v4919_v44 = vpop.f32.mrb[45].mxu1 }
 0x5f4   : > { %v4921_v5 = vpop.f32.mrb[46].mxu1 }
 0x5f5   : > { %v4923_v45 = vpop.f32.mrb[47].mxu1 }
 0x5fa   : > { %v4925_v6 = vpop.f32.mrb[48].mxu1 }
 0x5fb   : > { %v4927_v55 = vpop.f32.mrb[49].mxu1 }
 0x5fc   : > { %v4929_v7 = vpop.f32.mrb[50].mxu1 }
 0x5fd   : > { %v4931_v46 = vpop.f32.mrb[51].mxu1 }
 0x684   : > { %v4941_v49 = vpop.f32.mrb[52].mxu0 }
 0x685   : > { %v3978_v9 = vpop.f32.mrb[53].mxu0  ;;  %v2549_v50 = vmul.f32 %v4941_v49, %v2383_v2  ;;  %v2550_v51 = vmul.f32 %v4941_v49, %v2386_v32  ;;  %v2551_v52 = vmul.f32 %v3956_v28, %v4941_v49  ;;  %v2552_v53 = vmul.f32 %v3957_v12, %v4941_v49 }
 0x686   : > { %v2546_v54 = vpop.f32.mrb[54].mxu0  ;;  %v2553_v56 = vmul.f32 %v4941_v49, %v2399_v35  ;;  %v2554_v57 = vmul.f32 %v4941_v49, %v2402_v38  ;;  %v2555_v17 = vmul.f32 %v3960_v33, %v4941_v49  ;;  %v2556_v13 = vmul.f32 %v3961_v36, %v4941_v49 }
 0x687   : > { %v3979_v14 = vpop.f32.mrb[55].mxu0  ;;  %v2557_v19 = vsel %vm802_vm1, %v2549_v50, 0.0  ;;  %v2564_v18 = vsel %vm802_vm1, %v2550_v51, 0.0  ;;  %v2571_v59 = vsel %vm802_vm1, %v2551_v52, 0.0  ;;  %v2578_v58 = vsel %vm802_vm1, %v2552_v53, 0.0 }
 0x688   : > { %v2558_v27 = vrot.slane %v2557_v19, 4  ;;  %v2565_v29 = vrot.slane %v2564_v18, 4  ;;  %v2572_v30 = vrot.slane %v2571_v59, 4  ;;  %v2579_v22 = vrot.slane %v2578_v58, 4 }
 0x689   : > { %v2585_v15 = vsel %vm802_vm1, %v2553_v56, 0.0  ;;  %v2592_v25 = vsel %vm802_vm1, %v2554_v57, 0.0  ;;  %v2599_v24 = vsel %vm802_vm1, %v2555_v17, 0.0  ;;  %v2606_v23 = vsel %vm802_vm1, %v2556_v13, 0.0 }
 0x68a   : > { %v2559_v1 = vadd.f32 %v2558_v27, %v2557_v19  ;;  %v2566_v21 = vadd.f32 %v2565_v29, %v2564_v18  ;;  %v2573_v0 = vadd.f32 %v2572_v30, %v2571_v59  ;;  %v2580_v63 = vadd.f32 %v2579_v22, %v2578_v58 }
 0x68b   : > { %v2586_v26 = vrot.slane %v2585_v15, 4  ;;  %v2593_v28 = vrot.slane %v2592_v25, 4  ;;  %v2600_v2 = vrot.slane %v2599_v24, 4  ;;  %v2607_v12 = vrot.slane %v2606_v23, 4 }
 0x68c   : > { %v2560_v32 = vrot.slane %v2559_v1, 2  ;;  %v2567_v33 = vrot.slane %v2566_v21, 2  ;;  %v2574_v35 = vrot.slane %v2573_v0, 2  ;;  %v2581_v36 = vrot.slane %v2580_v63, 2 }
 0x68d   : > { %v2587_v38 = vadd.f32 %v2586_v26, %v2585_v15  ;;  %v2594_v39 = vadd.f32 %v2593_v28, %v2592_v25  ;;  %v2601_v40 = vadd.f32 %v2600_v2, %v2599_v24  ;;  %v2608_v41 = vadd.f32 %v2607_v12, %v2606_v23 }
 0x68e   : > { %v2561_v60 = vadd.f32 %v2560_v32, %v2559_v1  ;;  %v2568_v42 = vadd.f32 %v2567_v33, %v2566_v21  ;;  %v2575_v43 = vadd.f32 %v2574_v35, %v2573_v0  ;;  %v2582_v62 = vadd.f32 %v2581_v36, %v2580_v63 }
 0x68f   : > { %v2588_v47 = vrot.slane %v2587_v38, 2  ;;  %v2595_v48 = vrot.slane %v2594_v39, 2  ;;  %v2602_v9 = vrot.slane %v2601_v40, 2  ;;  %v2609_v50 = vrot.slane %v2608_v41, 2 }
 0x690   : > { %v2562_v51 = vrot.slane %v2561_v60, 1  ;;  %v2569_v52 = vrot.slane %v2568_v42, 1  ;;  %v2576_v53 = vrot.slane %v2575_v43, 1  ;;  %v2583_v54 = vrot.slane %v2582_v62, 1 }
 0x691   : > { %v2589_v56 = vadd.f32 %v2588_v47, %v2587_v38  ;;  %v2596_v57 = vadd.f32 %v2595_v48, %v2594_v39  ;;  %v2603_v17 = vadd.f32 %v2602_v9, %v2601_v40  ;;  %v2610_v13 = vadd.f32 %v2609_v50, %v2608_v41 }
 0x692   : > { %v2563_v14 = vadd.f32 %v2562_v51, %v2561_v60  ;;  %v2570_v19 = vadd.f32 %v2569_v52, %v2568_v42  ;;  %v2577_v18 = vadd.f32 %v2576_v53, %v2575_v43  ;;  %v2584_v59 = vadd.f32 %v2583_v54, %v2582_v62 }
 0x693   : > { %v2590_v58 = vrot.slane %v2589_v56, 1  ;;  %v2597_v27 = vrot.slane %v2596_v57, 1  ;;  %v2604_v29 = vrot.slane %v2603_v17, 1  ;;  %v2611_v30 = vrot.slane %v2610_v13, 1 }
 0x694   : > { %v2613_v22 = vpack.c.bf16 %v2563_v14, %v2563_v14  ;;  %v2614_v15 = vpack.c.bf16 %v2570_v19, %v2570_v19  ;;  %v2615_v25 = vpack.c.bf16 %v2577_v18, %v2577_v18  ;;  %v2616_v24 = vpack.c.bf16 %v2584_v59, %v2584_v59 }
 0x695   : > { %v2591_v23 = vadd.f32 %v2590_v58, %v2589_v56  ;;  %v2598_v1 = vadd.f32 %v2597_v27, %v2596_v57  ;;  %v2605_v21 = vadd.f32 %v2604_v29, %v2603_v17  ;;  %v2612_v0 = vadd.f32 %v2611_v30, %v2610_v13  ;;  %v3621_v57 = vld [vmem:[%s5188_s7 + $0x2] ss:$0 sm:$0xff] }
 0x696   : > { %v2642_v63 = vunpack.c.l.b16 %v2613_v22  ;;  %v2643_v26 = vunpack.c.l.b16 %v2614_v15  ;;  %v2644_v28 = vunpack.c.l.b16 %v2615_v25  ;;  %v2790_v35 = vmul.f32 %v4941_v49, %v4923_v45 }
 0x697   : > { %v2617_v2 = vpack.c.bf16 %v2591_v23, %v2591_v23  ;;  %v2618_v12 = vpack.c.bf16 %v2598_v1, %v2598_v1  ;;  %v2619_v32 = vpack.c.bf16 %v2605_v21, %v2605_v21  ;;  %v2792_v36 = vmul.f32 %v4921_v5, %v4941_v49 }
 0x698   : > { %v2650_v33 = vsel %vm945_vm3, %v2643_v26, %v2642_v63  ;;  %v2794_v38 = vmul.f32 %v4941_v49, %v4931_v46  ;;  %v2620_v39 = vpack.c.bf16 %v2612_v0, %v2612_v0  ;;  %v2645_v40 = vunpack.c.l.b16 %v2616_v24 }
 0x699   : > { %v2646_v41 = vunpack.c.l.b16 %v2617_v2  ;;  %v2647_v60 = vunpack.c.l.b16 %v2618_v12  ;;  %v2651_v42 = vsel %vm947_vm4, %v2644_v28, %v2650_v33  ;;  %v2796_v62 = vmul.f32 %v4929_v7, %v4941_v49 }
 0x69a   : > { %v2652_v43 = vsel %vm949_vm5, %v2645_v40, %v2651_v42  ;;  %v4972_v45 = vmul.f32 %v4941_v49, %v4919_v44  ;;  %v4976_v5 = vmul.f32 %v4917_v8, %v4941_v49  ;;  %v2648_v46 = vunpack.c.l.b16 %v2619_v32 }
 0x69b   : > { %v2653_v47 = vsel %vm951_vm6, %v2646_v41, %v2652_v43  ;;  %v2649_v48 = vunpack.c.l.b16 %v2620_v39  ;;  %v2798_v51 = vpack.c.bf16 %v2790_v35, %v2790_v35  ;;  %v4983_v7 = vmul.f32 %v4941_v49, %v4927_v55 }
 0x69c   : > { %v2654_v9 = vsel %vm953_vm7, %v2647_v60, %v2653_v47  ;;  %v4987_v44 = vmul.f32 %v4925_v6, %v4941_v49  ;;  %v2800_v54 = vpack.c.bf16 %v2792_v36, %v2792_v36  ;;  %v2802_v55 = vpack.c.bf16 %v2794_v38, %v2794_v38 }
 0x69d   : > { %v2655_v50 = vsel %vm955_vm8, %v2648_v46, %v2654_v9  ;;  %v2850_v53 = vsel %vm1579_vm10, %v2798_v51, 0  ;;  %v2797_v32 = vpack.c.bf16 %v4972_v45, %v4972_v45  ;;  %v2799_v41 = vpack.c.bf16 %v4976_v5, %v4976_v5 }
 0x69e   : > { %v2656_v8 = vsel %vm957_vm9, %v2649_v48, %v2655_v50  ;;  %v2938_v6 = vsel %vm1579_vm10, %v2800_v54, 0  ;;  %v3026_v49 = vsel %vm1579_vm10, %v2802_v55, 0  ;;  %v2801_v42 = vpack.c.bf16 %v4983_v7, %v4983_v7 }
 0x69f   : > { %v2657_v52 = vpack.c.b16 %v2656_v8, %v2656_v8  ;;  %v2806_v39 = vsel %vm1579_vm10, %v2797_v32, 0  ;;  %v2894_v60 = vsel %vm1579_vm10, %v2799_v41, 0 }
 0x6a0   : > { %v2982_v43 = vsel %vm1579_vm10, %v2801_v42, 0 }
 0x6a1   : > { %3985 = vmatmul.mubr.msk.bf16.vlgmr.msra.gmra.mrb[52].mxu1 %vm802_vm1, %v2657_v52 }
 0x6a2   : > { %4003 = vmatpush3.bf16.msra.mxu1 %v2850_v53  ;;  %4004 = vmatprep.mubr.msk.bf16.mxu1 %vm4290_vm2, %v4289_v3 }
 0x6a3   : > { %4014 = vmatprep.subr.bf16.mxu1 %v4289_v3 }
 0x6a9   : > { %4005 = vmatmul.mubr.msk.bf16.vlgmr.msra.gmra.mrb[28].mxu1 %vm1575_vm11, %v4824_v11  ;;  %v2804_v11 = vpack.c.bf16 %v2796_v62, %v2796_v62 }
 0x6aa   : > { %4015 = vmatpush3.bf16.msra.mxu1 %v2938_v6  ;;  %4016 = vmatprep.mubr.msk.bf16.mxu1 %vm4290_vm2, %v4289_v3 }
 0x6ab   : > { %4026 = vmatprep.subr.bf16.mxu1 %v4289_v3  ;;  %v3114_v56 = vsel %vm1579_vm10, %v2804_v11, 0 }
 0x6b1   : > { %4017 = vmatmul.mubr.msk.bf16.vlgmr.msra.gmra.mrb[32].mxu1 %vm1575_vm11, %v4835_v16  ;;  %v4199_v16 = vld [vmem:[%s5189_s8 + $0x20] sm:$0xff]  }
 0x6b2   : > { %4027 = vmatpush3.bf16.msra.mxu1 %v3026_v49  ;;  %4028 = vmatprep.mubr.msk.bf16.mxu1 %vm4290_vm2, %v4289_v3 }
 0x6b3   : > { %4038 = vmatprep.subr.bf16.mxu1 %v4289_v3  ;;  %3989 = vmatpush3.bf16.msra.mxu0 %v4199_v16 }
 0x6b4   : > { %3990 = vmatprep.subr.bf16.mxu0 %v4289_v3 }
 0x6b9   : > { %4029 = vmatmul.mubr.msk.bf16.vlgmr.msra.gmra.mrb[36].mxu1 %vm1575_vm11, %v4846_v20  ;;  %v4200_v20 = vld [vmem:[%s5189_s8 + $0x28] sm:$0xff]  }
 0x6ba   : > { %4039 = vmatpush3.bf16.msra.mxu1 %v3114_v56  ;;  %4040 = vmatprep.mubr.msk.bf16.mxu1 %vm4290_vm2, %v4289_v3 }
 0x6bb   : > { %4044 = vmatprep.subr.bf16.mxu1 %v4289_v3  ;;  %3991 = vmatpush3.bf16.msra.mxu0 %v4200_v20 }
 0x6bc   : > { %3996 = vmatprep.subr.bf16.mxu0 %v4289_v3 }
 0x6c1   : > { %4041 = vmatmul.mubr.msk.bf16.vlgmr.msra.gmra.mrb[40].mxu1 %vm1575_vm11, %v4857_v10  ;;  %v4201_v10 = vld [vmem:[%s5191_s10] sm:$0xff]  }
 0x6c2   : > { %4048 = vmatprep.mubr.msk.bf16.mxu1 %vm4290_vm2, %v4289_v3  ;;  %4045 = vmatpush3.bf16.msra.mxu1 %v4201_v10  ;;  %v4203_v10 = vld [vmem:[%s5193_s12] sm:$0xff]  }
 0x6c3   : > { %4046 = vmatprep.subr.bf16.mxu1 %v4289_v3 }
 0x774   : > { %v2707_v17 = vpop.f32.mrb[52].mxu1 }
 0x775   : > { %v2708_v13 = vadd.f32 %v3621_v57, %v2707_v17  ;;  %v3986_v14 = vpop.f32.mrb[53].mxu1  ;;  %v4204_v57 = vld [vmem:[%s5193_s12 + $0x8] sm:$0xff]   ;;  %v3642_v17 = vld [vmem:[%s5192_s11] ss:$0 sm:$0xff] }
 0x776   : > { %v2710_v19 = vpop.f32.mrb[54].mxu1 }
 0x777   : > { %v2713_v18 = vsub.f32 0.0, %v2708_v13  ;;  %v3987_v59 = vpop.f32.mrb[55].mxu1 }
 0x779   : > { %v2714_v58 = vmul.f32 1.442695, %v2713_v18 }
 0x77b   : > { %4213 = vpow2.f32 %v2714_v58 }
 0x77c   : > { %v2886_v27 = vpop.f32.mrb[28].mxu1 }
 0x77d   : > { %3326 = vst.msk [vmem:[%s5036_s28 + $0x10] sm:$0xff] %vm802_vm1, %v2886_v27  ;;  %v4006_v29 = vpop.f32.mrb[29].mxu1 }
 0x77e   : > { %v2889_v30 = vpop.f32.mrb[30].mxu1 }
 0x77f   : > { %3327 = vst.msk [vmem:[%s5036_s28 + $0x18] sm:$0xff] %vm802_vm1, %v2889_v30  ;;  %v4007_v22 = vpop.f32.mrb[31].mxu1 }
 0x784   : > { %v2974_v15 = vpop.f32.mrb[32].mxu1 }
 0x785   : > { %v4214_v25 = vpop.eup %4213  ;;  %3330 = vst.msk [vmem:[%s5036_s28 + $0x30] sm:$0xff] %vm802_vm1, %v2974_v15  ;;  %v4018_v24 = vpop.f32.mrb[33].mxu1 }
 0x786   : > { %v2716_v23 = vadd.f32 1.0, %v4214_v25  ;;  %v2977_v1 = vpop.f32.mrb[34].mxu1 }
 0x787   : > { %3331 = vst.msk [vmem:[%s5036_s28 + $0x38] sm:$0xff] %vm802_vm1, %v2977_v1  ;;  %v4019_v21 = vpop.f32.mrb[35].mxu1 }
 0x788   : > { %4215 = vrcp.f32 %v2716_v23 }
 0x78c   : > { %v3062_v0 = vpop.f32.mrb[36].mxu1 }
 0x78d   : > { %3334 = vst.msk [vmem:[%s5036_s28 + $0x50] sm:$0xff] %vm802_vm1, %v3062_v0  ;;  %v4030_v63 = vpop.f32.mrb[37].mxu1 }
 0x78e   : > { %v3065_v26 = vpop.f32.mrb[38].mxu1 }
 0x78f   : > { %3335 = vst.msk [vmem:[%s5036_s28 + $0x58] sm:$0xff] %vm802_vm1, %v3065_v26  ;;  %v4031_v28 = vpop.f32.mrb[39].mxu1 }
 0x792   : > { %v4216_v2 = vpop.eup %4215 }
 0x793   : > { %v2718_v12 = vmul.f32 %v4216_v2, %v2708_v13 }
 0x794   : > { %v3150_v33 = vpop.f32.mrb[40].mxu1 }
 0x795   : > { %v2719_v35 = vpack.c.bf16 %v2718_v12, %v2718_v12  ;;  %3338 = vst.msk [vmem:[%s5036_s28 + $0x70] sm:$0xff] %vm802_vm1, %v3150_v33  ;;  %v4042_v36 = vpop.f32.mrb[41].mxu1 }
 0x796   : > { %v3153_v38 = vpop.f32.mrb[42].mxu1 }
 0x797   : > { %3339 = vst.msk [vmem:[%s5036_s28 + $0x78] sm:$0xff] %vm802_vm1, %v3153_v38  ;;  %3993 = vmatmul.mubr.msk.bf16.vlgmr.msra.gmra.mrb[56].mxu0 %vm802_vm1, %v2719_v35  ;;  %v4043_v40 = vpop.f32.mrb[43].mxu1 }
 0x798   : > { %3997 = vmatpush3.bf16.msra.mxu0 %v2806_v39  ;;  %3998 = vmatprep.mubr.msk.bf16.mxu0 %vm4290_vm2, %v4289_v3 }
 0x799   : > { %4008 = vmatprep.subr.bf16.mxu0 %v4289_v3 }
 0x79f   : > { %3999 = vmatmul.mubr.msk.bf16.vlgmr.msra.gmra.mrb[28].mxu0 %vm1575_vm11, %v4721_v4  ;;  %v2803_v4 = vpack.c.bf16 %v4987_v44, %v4987_v44 }
 0x7a0   : > { %4009 = vmatpush3.bf16.msra.mxu0 %v2894_v60  ;;  %4010 = vmatprep.mubr.msk.bf16.mxu0 %vm4290_vm2, %v4289_v3 }
 0x7a1   : > { %4020 = vmatprep.subr.bf16.mxu0 %v4289_v3  ;;  %v3070_v62 = vsel %vm1579_vm10, %v2803_v4, 0 }
 0x7a7   : > { %4011 = vmatmul.mubr.msk.bf16.vlgmr.msra.gmra.mrb[32].mxu0 %vm1575_vm11, %v4730_v31  ;;  %v4202_v31 = vld [vmem:[%s5191_s10 + $0x8] sm:$0xff]  }
 0x7a8   : > { %4021 = vmatpush3.bf16.msra.mxu0 %v2982_v43  ;;  %4022 = vmatprep.mubr.msk.bf16.mxu0 %vm4290_vm2, %v4289_v3 }
 0x7a9   : > { %4032 = vmatprep.subr.bf16.mxu0 %v4289_v3  ;;  %4047 = vmatpush3.bf16.msra.mxu1 %v4202_v31 }
 0x7af   : > { %4023 = vmatmul.mubr.msk.bf16.vlgmr.msra.gmra.mrb[36].mxu0 %vm1575_vm11, %v4739_v34  ;;  %v3630_v34 = vld [vmem:[%s5190_s9 + $0x2] ss:$0 sm:$0xff] }
 0x7b0   : > { %4033 = vmatpush3.bf16.msra.mxu0 %v3070_v62  ;;  %4034 = vmatprep.mubr.msk.bf16.mxu0 %vm4290_vm2, %v4289_v3 }
 0x7b1   : > { %4052 = vmatprep.subr.bf16.mxu0 %v4289_v3 }
 0x7b7   : > { %4035 = vmatmul.mubr.msk.bf16.vlgmr.msra.gmra.mrb[40].mxu0 %vm1575_vm11, %v4748_v37 }
 0x7b8   : > { %4056 = vmatprep.mubr.msk.bf16.mxu0 %vm4290_vm2, %v4289_v3  ;;  %4053 = vmatpush3.bf16.msra.mxu0 %v4203_v10 }
 0x7b9   : > { %4054 = vmatprep.subr.bf16.mxu0 %v4289_v3 }
 0x7bc   : > { %4055 = vmatpush3.bf16.msra.mxu0 %v4204_v57 }
 0x86a   : > { %v2782_v37 = vpop.f32.mrb[56].mxu0 }
 0x86b   : > { %v2783_v45 = vadd.f32 %v3630_v34, %v2782_v37  ;;  %v3994_v5 = vpop.f32.mrb[57].mxu0 }
 0x86c   : > { %v2785_v46 = vpop.f32.mrb[58].mxu0 }
 0x86d   : > { %v2788_v47 = vadd.f32 %v2783_v45, %v4910_v61  ;;  %v3995_v48 = vpop.f32.mrb[59].mxu0 }
 0x86f   : > { %v3173_v9 = vpack.c.bf16 %v2788_v47, %v2788_v47  ;;  %3323 = vst.msk [vmem:[%s550_s30] sm:$0xff] %vm802_vm1, %v2788_v47 }
 0x871   : > { %4049 = vmatmul.mubr.msk.bf16.vlgmr.msra.gmra.mrb[56].mxu1 %vm802_vm1, %v3173_v9 }
 0x872   : > { %v2842_v50 = vpop.f32.mrb[28].mxu0 }
 0x873   : > { %3324 = vst.msk [vmem:[%s5036_s28] sm:$0xff] %vm802_vm1, %v2842_v50  ;;  %v4000_v51 = vpop.f32.mrb[29].mxu0 }
 0x874   : > { %v2845_v7 = vpop.f32.mrb[30].mxu0 }
 0x875   : > { %3325 = vst.msk [vmem:[%s5036_s28 + $0x8] sm:$0xff] %vm802_vm1, %v2845_v7  ;;  %v4001_v61 = vpop.f32.mrb[31].mxu0 }
 0x87a   : > { %v2930_v44 = vpop.f32.mrb[32].mxu0 }
 0x87b   : > { %3328 = vst.msk [vmem:[%s5036_s28 + $0x20] sm:$0xff] %vm802_vm1, %v2930_v44  ;;  %v4012_v8 = vpop.f32.mrb[33].mxu0 }
 0x87c   : > { %v2933_v52 = vpop.f32.mrb[34].mxu0 }
 0x87d   : > { %3329 = vst.msk [vmem:[%s5036_s28 + $0x28] sm:$0xff] %vm802_vm1, %v2933_v52  ;;  %v4013_v53 = vpop.f32.mrb[35].mxu0 }
 0x882   : > { %v3018_v54 = vpop.f32.mrb[36].mxu0 }
 0x883   : > { %3332 = vst.msk [vmem:[%s5036_s28 + $0x40] sm:$0xff] %vm802_vm1, %v3018_v54  ;;  %v4024_v6 = vpop.f32.mrb[37].mxu0 }
 0x884   : > { %v3021_v55 = vpop.f32.mrb[38].mxu0 }
 0x885   : > { %3333 = vst.msk [vmem:[%s5036_s28 + $0x48] sm:$0xff] %vm802_vm1, %v3021_v55  ;;  %v4025_v49 = vpop.f32.mrb[39].mxu0 }
 0x88a   : > { %v3106_v11 = vpop.f32.mrb[40].mxu0 }
 0x88b   : > { %3336 = vst.msk [vmem:[%s5036_s28 + $0x60] sm:$0xff] %vm802_vm1, %v3106_v11  ;;  %v4036_v56 = vpop.f32.mrb[41].mxu0 }
 0x88c   : > { %v3109_v16 = vpop.f32.mrb[42].mxu0 }
 0x88d   : > { %3337 = vst.msk [vmem:[%s5036_s28 + $0x68] sm:$0xff] %vm802_vm1, %v3109_v16  ;;  %v4037_v20 = vpop.f32.mrb[43].mxu0  ;;  %s3651_s28 = sshll.u32 %s4401_s13, 7 }
 0x88e   : > { %s5137_s19 = scalar_lea.hbm %s5196_s15, %s3651_s28 }
 0x944   : > { %v3234_v13 = vpop.f32.mrb[56].mxu1 }
 0x945   : > { %v3235_v14 = vadd.f32 %v3642_v17, %v3234_v13  ;;  %v4050_v19 = vpop.f32.mrb[57].mxu1 }
 0x946   : > { %v3237_v18 = vpop.f32.mrb[58].mxu1 }
 0x947   : > { %v3240_v59 = vsub.f32 0.0, %v3235_v14  ;;  %v4051_v58 = vpop.f32.mrb[59].mxu1 }
 0x949   : > { %v3241_v27 = vmul.f32 1.442695, %v3240_v59 }
 0x94b   : > { %4217 = vpow2.f32 %v3241_v27 }
 0x955   : > { %v4218_v29 = vpop.eup %4217 }
 0x956   : > { %v3243_v30 = vadd.f32 1.0, %v4218_v29 }
 0x958   : > { %4219 = vrcp.f32 %v3243_v30 }
 0x962   : > { %v4220_v3 = vpop.eup %4219 }
 0x963   : > { %v3245_v22 = vmul.f32 %v4220_v3, %v3235_v14 }
 0x965   : > { %v3246_v15 = vpack.c.bf16 %v3245_v22, %v3245_v22 }
 0x967   : > { %4057 = vmatmul.mubr.msk.bf16.vlgmr.msra.gmra.mrb[60].mxu0 %vm802_vm1, %v3246_v15 }
 0x968   : > { %4238 = shalt.err (!%p4235_p3)
}
 0x969   : > { %s4239_s13 = scalar_lea.hbm %s5137_s19, 128  ;;  %s4243_s30 = scalar_lea.hbm %s5196_s15, 512 }
 0x96a   : > { %p4240_p4 = scmp.ne.s32.totalorder %s5137_s19, %s4239_s13  ;;  %p4244_p9 = scmp.lt.u32.totalorder %s5137_s19, %s5196_s15 }
 0x96b   : > { %p4245_p10 = scmp.lt.u32.totalorder %s4243_s30, %s4239_s13  ;;  %p4247_p12 = scmp.lt.u32.totalorder %s4239_s13, %s5137_s19 }
 0x96c   : > { %p4241_p7 = pnand %p4240_p4, %p4418_p5 }
 0x96d   : > { %p4246_p11 = por %p4245_p10, %p4244_p9 }
 0x96e   : > { %p4242_p8 = pneg %p4241_p7 }
 0x96f   : > { %p4248_p13 = por %p4247_p12, %p4246_p11 }
 0x971   : > { %p4249_p0 = pnand %p4248_p13, %p4242_p8 }
 0x973   : > { %4252 = shalt.err (!%p4249_p0)
}
 0x974   : > { %4124 = dma.vmem_to_hbm [thread:$0]  (%p4418_p5), %s3366_s25, 128, %s5137_s19, %s3344_s20   ;;  %v3646_v25 = vld [vmem:[#allocation2] ss:$0 sm:$0xff]  ;;  %vm3313_vm12 = vcmask 7168   ;;  %vm3321_vm13 = vcmask 0  }
 0x975   : > { %s574_s17 = scalar_lea.vmem %s5195_s14, %s4433_s21 }
 0xa3a   : > { %v3307_v24 = vpop.f32.mrb[60].mxu0 }
 0xa3b   : > { %v3308_v23 = vadd.f32 %v3646_v25, %v3307_v24  ;;  %v4058_v1 = vpop.f32.mrb[61].mxu0 }
 0xa3c   : > { %v3310_v21 = vpop.f32.mrb[62].mxu0 }
 0xa3d   : > { %v3314_v0 = vsel %vm3313_vm12, %v3308_v23, 0.0  ;;  %v4059_v63 = vpop.f32.mrb[63].mxu0 }
 0xa3e   : > { %v3315_v26 = vrot.slane %v3314_v0, 4 }
 0xa40   : > { %v3316_v28 = vadd.f32 %v3315_v26, %v3314_v0 }
 0xa42   : > { %v3317_v2 = vrot.slane %v3316_v28, 2 }
 0xa44   : > { %v3318_v12 = vadd.f32 %v3317_v2, %v3316_v28 }
 0xa46   : > { %v3319_v32 = vrot.slane %v3318_v12, 1 }
 0xa48   : > { %v3320_v33 = vadd.f32 %v3319_v32, %v3318_v12 }
 0xa4a   : > { %3322 = vst.msk [vmem:[%s574_s17] sm:$0x1] %vm3321_vm13, %v3320_v33 }
 0xa4b PF: > { %s5216_s19 = sld [smem:[#allocation6_spill]]  ;;  %p4130_p5 = scmp.ge.s32.totalorder %s4287_s26, 2 }
 0xa4d   : > { %p4127_p1 = pnand %p4130_p5, %p4422_p6 }
 0xa51   : > { %s3386_s20 = sand.u32 1, %s5216_s19  }
 0xa52   : > { %s3387_s1 = scalar_lea.sflag [#allocation4], %s3386_s20 }
 0xa53   : > { %4270 = dma.done.wait (!%p4127_p1), %s3387_s1, 128  }
 0xa54   : > { %4272 = vsyncadd (!%p4127_p1), %s3387_s1, 4294967168  ;;  %s5218_s26 = sld [smem:[#allocation8_spill]]  ;;  %s5219_s18 = sld [smem:[#allocation7_spill]] }
 0xa55   : > { %s5220_s25 = sld [smem:[#allocation9_spill]]  ;;  %s5221_s23 = smov %s4279_s24 }
 0xa5a   : > { %p29_p2 = scmp.ge.s32.totalorder %s5218_s26, 6   ;;  %s5222_s24 = smov %s5219_s18 }
 0xa5c   :  { %31 = sbr.rel (!%p29_p2) target bundleno = 7 (0x7), region = 155 }
 0xa63   :  { %3400 = vsyncpa [#allocation4], 1 }
 0xa64   :  { %3402 = vsyncpa [#allocation4 + $0x1], 1 }

</bundles_post_ra>
